<compile_context>
chip_gen: v7x
topology: tpu7x:2x2x1
jax: 0.10.0
libtpu: 0.0.40
codegen_flags: <defaults>
</compile_context>

<pallas_src>
import numpy as np
import jax
import jax.numpy as jnp
from jax.experimental import pallas as pl
from jax.experimental.pallas import tpu as pltpu

# ----------------------------- configuration ---------------------------------
B = 2            # batch
L = 8            # in_len (sequence length)
D = 4            # in_dim
HID = 32         # hidden_size
MEM = 16         # memory_size
OUT = 4          # out_len
THETA = 8.0
NUM_LAYERS = 2   # kernel below is specialized to 2 LMUFFT layers
EPS = 1e-8
OUT_PAD = 128    # head output padded to a full lane tile (dense vst)

# Debug knobs (correctness-review request): set MXU_DTYPE = jnp.float32 and
# APPROX_RECIP = False for a near-exact validation variant of the same kernel.
MXU_DTYPE = jnp.bfloat16
APPROX_RECIP = True


# ----------------------- LMU state space / impulse (host glue) ---------------
def lmu_impulse(memory_size, seq_len, theta):
    """ZOH-discretized LMU (A,B) and impulse response H [memory, seq_len]."""
    Q = np.arange(memory_size, dtype=np.float64)
    R = (2.0 * Q + 1.0) / theta
    i, j = np.meshgrid(Q, Q, indexing="ij")
    A = R[:, None] * np.where(i < j, -1.0, (-1.0) ** (i - j + 1))
    Bm = (R * (-1.0) ** Q)[:, None]
    aug = np.zeros((memory_size + 1, memory_size + 1), dtype=np.float64)
    aug[:memory_size, :memory_size] = A
    aug[:memory_size, memory_size:] = Bm
    Eaug = jax.scipy.linalg.expm(jnp.asarray(aug, dtype=jnp.float32))
    Ad = Eaug[:memory_size, :memory_size]
    Bd = Eaug[:memory_size, memory_size:]
    cols = []
    A_i = jnp.eye(memory_size, dtype=jnp.float32)
    for _ in range(seq_len):
        cols.append(A_i @ Bd)            # [memory, 1]
        A_i = Ad @ A_i
    return jnp.concatenate(cols, axis=-1)   # [memory, seq_len]


def causal_conv_tensor(H, seq_len, memory_size):
    """G[s, t, k] = H[k, t-s] if t >= s else 0: the rfft/irfft causal conv as a
    Toeplitz operator, m[t, k] = sum_s u[s] * G[s, t, k]."""
    Hn = np.asarray(H)
    G = np.zeros((seq_len, seq_len, memory_size), dtype=np.float32)
    for s in range(seq_len):
        for t in range(s, seq_len):
            G[s, t, :] = Hn[:, t - s]
    return G


# ------------------------------ host-side packing -----------------------------
def block_diag_time(w, seq_len):
    """[Din, Dout] -> [seq_len*Din, seq_len*Dout]: w repeated on the per-time-step
    block diagonal, so a per-step Linear becomes one lane-dense matmul on the
    flattened [TB, L*Din] activations."""
    w = np.asarray(w, dtype=np.float32)
    din, dout = w.shape
    out = np.zeros((seq_len * din, seq_len * dout), dtype=np.float32)
    for t in range(seq_len):
        out[t * din:(t + 1) * din, t * dout:(t + 1) * dout] = w
    return out


def pack_slab(entries, width, dtype, row_align):
    """Pack (name, 2D array) entries into one [R, width] slab.

    Each entry starts at a row offset that is a multiple of `row_align`
    (8 for f32, 16 for bf16) so in-kernel static slices never straddle
    packing tiles.  layout[name] = (row_offset, n_rows, n_cols)."""
    layout = {}
    chunks = []
    off = 0
    for name, arr in entries:
        a = np.asarray(arr, dtype=np.float32)
        if a.ndim == 1:
            a = a[None, :]
        r, c = a.shape
        assert c <= width, (name, c, width)
        layout[name] = (off, r, c)
        nr = -(-r // row_align) * row_align
        buf = np.zeros((nr, width), dtype=np.float32)
        buf[:r, :c] = a
        chunks.append(buf)
        off += nr
    slab = jnp.asarray(np.concatenate(chunks, axis=0)).astype(dtype)
    return slab, layout


def pick_batch_tile(batch, seq_len, target_rows=256):
    """Per-grid-step batch tile.

    * Keep >= 2 grid steps whenever batch >= 2 so the 'parallel' grid axis can
      shard across v7x's two TensorCores (v5e/v6e have 1 TC; neutral there).
    * Otherwise grow the tile toward ~target_rows MXU rows (256 for the 2x256
      MXU on v6e/v7x; use 128 on v5e) while dividing the batch, and keep the
      tile sublane-aligned (multiple of 8) once it is large enough."""
    tb = max(1, min(batch // 2, max(1, target_rows // seq_len)))
    if tb >= 8:
        tb -= tb % 8
    while batch % tb:
        tb -= 1
    return tb


# --------------------------------- kernel ------------------------------------
def make_lmufft_pred_kernel(f_layout, w_layout, batch_tile):
    TB = batch_tile
    LD = L * D
    LH = L * HID

    def kernel(x_ref, fslab_ref, wslab_ref, o_ref):
        # Static slab slices (Python-constant offsets -> zero-cost views).
        def fp(name):                       # f32 slab: biases + DAIN weights
            r, nr, nc = f_layout[name]
            return fslab_ref[r:r + nr, 0:nc]

        def wp(name):                       # MXU-weight slab (bf16)
            r, nr, nc = w_layout[name]
            return wslab_ref[r:r + nr, 0:nc]

        def mm(a_mx, name):                 # lane-dense MXU matmul, f32 acc
            return jnp.dot(a_mx, wp(name), preferred_element_type=jnp.float32)

        def vpu_matvec(v, w):
            # Tiny [TB, K] @ [K, N] (K = N = in_dim = 4) as VPU broadcast
            # multiply-adds: keeps the serial DAIN prologue off the MXU.
            acc = v[:, 0:1] * w[0:1, :]
            for i in range(1, w.shape[0]):
                acc = acc + v[:, i:i + 1] * w[i:i + 1, :]
            return acc

        x3 = x_ref[...]                     # [TB, L, D] f32 (raw input)

        # ------------------- DAIN (mode='full'), f32 on the VPU --------------
        avg = jnp.mean(x3, axis=1)                                   # [TB, D]
        a_avg = vpu_matvec(avg, fp("wmean"))
        xc = x3 - a_avg[:, None, :]
        std = jnp.sqrt(jnp.mean(xc * xc, axis=1) + EPS)              # [TB, D]
        a_std = vpu_matvec(std, fp("wscale"))
        a_std = jnp.where(a_std <= EPS, 1.0, a_std)
        if APPROX_RECIP:
            inv = pl.reciprocal(a_std, approx=True)   # EUP slot (~2^-12 rel err)
        else:
            inv = 1.0 / a_std
        # mean_t(xs) == (mean_t(x) - a_avg) * inv  (inv, a_avg are t-invariant)
        gate = jax.nn.sigmoid(vpu_matvec((avg - a_avg) * inv, fp("wgate"))
                              + fp("bgate"))                         # [TB, D]
        x0_3d = xc * (inv * gate)[:, None, :]                        # [TB, L, D]

        # Flatten time into lanes ONCE; everything below stays in the
        # lane-dense [TB, L*feat] layout (no [TB*L, feat] relayouts).
        xr = x3.reshape(TB, LD).astype(MXU_DTYPE)      # raw input  -> skip path
        x0 = x0_3d.reshape(TB, LD).astype(MXU_DTYPE)   # DAIN'd input -> layer 0

        # Skip connection uses the raw (pre-DAIN) input, exactly as the module.
        identity = mm(xr, "wskip_bd") + fp("bskip_t")                # [TB, L*HID]

        # ------------------------- LMUFFT layer 0 ----------------------------
        # TODO(synk): nn.Dropout(0.1) train-mode randomness not implemented (eval => identity).
        u0 = jnp.maximum(mm(x0, "wu0_bd") + fp("bu0"), 0.0)          # [TB, L]
        h0 = jnp.maximum(mm(u0.astype(MXU_DTYPE), "c0")              # (u @ G) . Wh_mem, folded
                         + mm(x0, "wx0_bd") + fp("bh0_t"), 0.0)      # [TB, L*HID]
        h_n0 = h0[:, (L - 1) * HID:LH]                               # static lane slice [TB, HID]
        x1 = jnp.tanh(h0 + identity).astype(MXU_DTYPE)               # residual + tanh (dropout = id)

        # ------------------------- LMUFFT layer 1 ----------------------------
        u1 = jnp.maximum(mm(x1, "wu1_bd") + fp("bu1"), 0.0)          # [TB, L]
        h1 = jnp.maximum(mm(u1.astype(MXU_DTYPE), "c1")
                         + mm(x1, "wx1_bd") + fp("bh1_t"), 0.0)      # [TB, L*HID]
        h_n1 = h1[:, (L - 1) * HID:LH]                               # [TB, HID]

        # -------------------------------- head --------------------------------
        # (the module computes tanh(h_n) and then discards it; dropout = identity)
        h_cat = jnp.concatenate([h_n0, h_n1], axis=-1)               # [TB, 2*HID] lane concat
        out = mm(h_cat.astype(MXU_DTYPE), "wfc") + fp("bfc")         # [TB, 128] lane-dense
        o_ref[0] = out.astype(o_ref.dtype)                           # dense (unmasked) store

    return kernel


# -------------------------------- wrapper -------------------------------------
def lmufft_pred_forward(x, fslab, f_layout, wslab, w_layout, batch_tile):
    batch = x.shape[0]
    tb = batch_tile
    assert batch % tb == 0
    n_tiles = batch // tb
    kernel = make_lmufft_pred_kernel(f_layout, w_layout, tb)

    def build(single_buffer_consts):
        # Grid-invariant constant slabs: request a single VMEM buffer so they
        # are not double-buffered across grid steps (halves the constant VMEM
        # footprint -- matters once c0/c1 grow O(L^2*HID) against v7x's 64 MiB).
        ckw = dict(pipeline_mode=pl.Buffered(1)) if single_buffer_consts else {}
        return pl.pallas_call(
            kernel,
            out_shape=jax.ShapeDtypeStruct((n_tiles, tb, OUT_PAD), jnp.float32),
            grid=(n_tiles,),
            in_specs=[
                pl.BlockSpec((tb, L, D), lambda i: (i, 0, 0)),       # batch tile of x
                pl.BlockSpec(fslab.shape, lambda i: (0, 0), **ckw),  # f32 constant slab
                pl.BlockSpec(wslab.shape, lambda i: (0, 0), **ckw),  # bf16 constant slab
            ],
            # 3-D output block whose last two dims equal the full array dims, so
            # any TB (including TB=1 on tiny batches) satisfies the (8,128)
            # tiling rule and the 128-lane store is a dense vst.
            out_specs=pl.BlockSpec((1, tb, OUT_PAD), lambda i: (i, 0, 0)),
            # >= 2 grid steps + 'parallel' => both v7x TensorCores are used.
            # At production L: raise vmem_limit_bytes here (v5e scoped default
            # 16 MiB, v6e/v7x 32 MiB) and tile c0/c1 on a second "arbitrary" axis.
            compiler_params=pltpu.CompilerParams(
                dimension_semantics=("parallel",)),
        )

    try:
        out = build(True)(x, fslab, wslab)
    except Exception:
        # This JAX build rejects pipeline_mode=pl.Buffered(1) on a top-level
        # BlockSpec; fall back to the default (double-buffered) constant specs.
        out = build(False)(x, fslab, wslab)
    return out.reshape(batch, OUT_PAD)[:, :OUT]


# ----------------------- pure-JAX reference (uses real FFT) -------------------
def forward_ref(x, params, H):
    (wskip, bskip, wmean, wscale, wgate, bgate,
     wu0, bu0, wh0, bh0, wu1, bu1, wh1, bh1, wfc, bfc) = params
    identity = x @ wskip + bskip
    avg = x.mean(axis=1)
    x = x - (avg @ wmean)[:, None, :]
    std = jnp.sqrt((x * x).mean(axis=1) + EPS)
    astd = std @ wscale
    astd = jnp.where(astd <= EPS, 1.0, astd)
    x = x / astd[:, None, :]
    gate = jax.nn.sigmoid(x.mean(axis=1) @ wgate + bgate)
    x = x * gate[:, None, :]

    fft_H = jnp.fft.rfft(H, n=2 * L, axis=-1)                    # [MEM, L+1]
    h_ns = []
    cur = x
    for i, (wu, bu, wh, bh) in enumerate([(wu0, bu0, wh0, bh0), (wu1, bu1, wh1, bh1)]):
        u = jax.nn.relu(cur @ wu + bu)                           # [B, L, 1]
        fft_u = jnp.fft.rfft(jnp.transpose(u, (0, 2, 1)), n=2 * L, axis=-1)
        m = jnp.fft.irfft(fft_u * fft_H[None], n=2 * L, axis=-1)[:, :, :L]
        m = jnp.transpose(m, (0, 2, 1))                          # [B, L, MEM]
        h = jax.nn.relu(jnp.concatenate([m, cur], axis=-1) @ wh + bh)
        h_ns.append(h[:, -1, :])
        if i < NUM_LAYERS - 1:
            cur = jnp.tanh(h + identity)
    h_n = jnp.concatenate(h_ns, axis=-1)
    return h_n @ wfc + bfc


# ---------------------------------- main --------------------------------------
def linear_params(key, in_f, out_f):
    """Deterministic torch-style init; weight stored already transposed as [in, out]."""
    kw, kb = jax.random.split(key)
    bound = 1.0 / np.sqrt(in_f)
    w = jax.random.uniform(kw, (in_f, out_f), jnp.float32, -bound, bound)
    b = jax.random.uniform(kb, (1, out_f), jnp.float32, -bound, bound)
    return w, b


if __name__ == "__main__":
    key = jax.random.PRNGKey(0)
    keys = jax.random.split(key, 8)

    x = jax.random.normal(keys[0], (B, L, D), jnp.float32)

    wskip, bskip = linear_params(keys[1], D, HID)            # skip_fc
    wgate, bgate = linear_params(keys[2], D, D)              # DAIN gating layer
    wmean = jnp.eye(D, dtype=jnp.float32)                    # DAIN mean layer (eye init, no bias)
    wscale = jnp.eye(D, dtype=jnp.float32)                   # DAIN scaling layer (eye init, no bias)
    wu0, bu0 = linear_params(keys[3], D, 1)                  # LMUFFT layer 0: W_u
    wh0, bh0 = linear_params(keys[4], MEM + D, HID)          # LMUFFT layer 0: W_h
    wu1, bu1 = linear_params(keys[5], HID, 1)                # LMUFFT layer 1: W_u
    wh1, bh1 = linear_params(keys[6], MEM + HID, HID)        # LMUFFT layer 1: W_h
    wfc, bfc = linear_params(keys[7], NUM_LAYERS * HID, OUT) # final fc

    # Shared impulse response (same theta / memory / seq_len for both layers).
    H = lmu_impulse(MEM, L, THETA)                           # [MEM, L]
    G3 = causal_conv_tensor(H, L, MEM)                       # [L, L, MEM]

    # ---- host-side weight surgery: split W_h, fold G into W_h_mem (exact),
    #      expand per-timestep Linears into time-block-diagonal matrices so the
    #      kernel stays in the lane-dense [TB, L*feat] layout.
    wh0_m, wh0_x = np.asarray(wh0)[:MEM], np.asarray(wh0)[MEM:]
    wh1_m, wh1_x = np.asarray(wh1)[:MEM], np.asarray(wh1)[MEM:]
    # At production L keep G and Wh_mem separate (two matmuls) instead of this
    # fold, which multiplies conv weight bytes/FLOPs by HID/MEM.
    c0 = np.einsum("stk,kh->sth", G3, wh0_m).reshape(L, L * HID)   # [L, L*HID]
    c1 = np.einsum("stk,kh->sth", G3, wh1_m).reshape(L, L * HID)

    wskip_bd = block_diag_time(wskip, L)                     # [L*D,   L*HID]
    wx0_bd = block_diag_time(wh0_x, L)                       # [L*D,   L*HID]
    wx1_bd = block_diag_time(wh1_x, L)                       # [L*HID, L*HID]
    wu0_bd = block_diag_time(wu0, L)                         # [L*D,   L]
    wu1_bd = block_diag_time(wu1, L)                         # [L*HID, L]

    bskip_t = np.tile(np.asarray(bskip), (1, L))             # [1, L*HID]
    bh0_t = np.tile(np.asarray(bh0), (1, L))
    bh1_t = np.tile(np.asarray(bh1), (1, L))

    wfc_pad = np.zeros((NUM_LAYERS * HID, OUT_PAD), np.float32)
    wfc_pad[:, :OUT] = np.asarray(wfc)                       # lane-dense head weight
    bfc_pad = np.zeros((1, OUT_PAD), np.float32)
    bfc_pad[0, :OUT] = np.asarray(bfc)[0]

    # ---- pack constants into two pre-padded slabs (3 kernel inputs total).
    SLAB_W = L * HID                                          # 256 lanes
    fslab, f_layout = pack_slab(
        [("bskip_t", bskip_t), ("bh0_t", bh0_t), ("bh1_t", bh1_t),
         ("bu0", bu0), ("bu1", bu1), ("bfc", bfc_pad), ("bgate", bgate),
         ("wmean", wmean), ("wscale", wscale), ("wgate", wgate)],
        width=SLAB_W, dtype=jnp.float32, row_align=8)
    wslab, w_layout = pack_slab(
        [("wskip_bd", wskip_bd), ("wu0_bd", wu0_bd), ("wx0_bd", wx0_bd), ("c0", c0),
         ("wu1_bd", wu1_bd), ("wx1_bd", wx1_bd), ("c1", c1), ("wfc", wfc_pad)],
        width=SLAB_W, dtype=MXU_DTYPE, row_align=16)

    TB = pick_batch_tile(B, L)                                # = 1 here -> grid (2,)

    out = lmufft_pred_forward(x, fslab, f_layout, wslab, w_layout, TB)
    out = jax.block_until_ready(out)

    # Reference is the f32 FFT path with the original (unsplit, unfolded) weights;
    # the kernel deliberately uses bf16 MXU operands + approx reciprocal, hence
    # the loose tolerance (set MXU_DTYPE=f32, APPROX_RECIP=False to tighten).
    params_ref = (wskip, bskip, wmean, wscale, wgate, bgate,
                  wu0, bu0, wh0, bh0, wu1, bu1, wh1, bh1, wfc, bfc)
    ref = forward_ref(x, params_ref, H)
    np.testing.assert_allclose(np.asarray(out), np.asarray(ref), rtol=1e-1, atol=5e-2)

    print("KERNEL_OK")
</pallas_src>

<mosaic_0001>
module attributes {stable_mosaic.version = 11 : i64} {
  func.func @kernel(%arg0: i32, %arg1: memref<1x8x4xf32, #tpu.memory_space<vmem>>, %arg2: memref<80x256xf32, #tpu.memory_space<vmem>>, %arg3: memref<704x256xbf16, #tpu.memory_space<vmem>>, %arg4: memref<1x1x128xf32, #tpu.memory_space<vmem>>) attributes {dimension_semantics = [#tpu.dimension_semantics<parallel>], iteration_bounds = array<i64: 2>, scalar_prefetch = 0 : i64, scratch_operands = 0 : i64, tpu.core_type = #tpu.core_type<tc>, window_params = [{transform_indices = @transform_0, window_bounds = array<i64: 1, 8, 4>}, {pipeline_mode = #tpu.pipeline_mode<synchronous>, transform_indices = @transform_1, window_bounds = array<i64: 80, 256>}, {pipeline_mode = #tpu.pipeline_mode<synchronous>, transform_indices = @transform_2, window_bounds = array<i64: 704, 256>}, {transform_indices = @transform_3, window_bounds = array<i64: 1, 1, 128>}]} {
    %c0 = arith.constant 0 : index
    %c0_0 = arith.constant 0 : index
    %c0_1 = arith.constant 0 : index
    %0 = vector.load %arg1[%c0, %c0_0, %c0_1] : memref<1x8x4xf32, #tpu.memory_space<vmem>>, vector<1x8x4xf32>
    %cst = arith.constant dense<0.000000e+00> : vector<1x4xf32>
    %1 = vector.multi_reduction <add>, %0, %cst [1] : vector<1x8x4xf32> to vector<1x4xf32>
    %cst_2 = arith.constant 8.000000e+00 : f32
    %2 = vector.broadcast %cst_2 : f32 to vector<1x4xf32>
    %3 = arith.divf %1, %2 : vector<1x4xf32>
    %c56 = arith.constant 56 : index
    %c0_3 = arith.constant 0 : index
    %4 = vector.load %arg2[%c56, %c0_3] : memref<80x256xf32, #tpu.memory_space<vmem>>, vector<4x4xf32>
    %5 = vector.extract_strided_slice %3 {offsets = [0, 0], sizes = [1, 1], strides = [1, 1]} : vector<1x4xf32> to vector<1x1xf32>
    %6 = vector.extract_strided_slice %4 {offsets = [0, 0], sizes = [1, 4], strides = [1, 1]} : vector<4x4xf32> to vector<1x4xf32>
    %7 = vector.broadcast %5 : vector<1x1xf32> to vector<1x4xf32>
    %8 = arith.mulf %7, %6 : vector<1x4xf32>
    %9 = vector.extract_strided_slice %3 {offsets = [0, 1], sizes = [1, 1], strides = [1, 1]} : vector<1x4xf32> to vector<1x1xf32>
    %10 = vector.extract_strided_slice %4 {offsets = [1, 0], sizes = [1, 4], strides = [1, 1]} : vector<4x4xf32> to vector<1x4xf32>
    %11 = vector.broadcast %9 : vector<1x1xf32> to vector<1x4xf32>
    %12 = arith.mulf %11, %10 : vector<1x4xf32>
    %13 = arith.addf %8, %12 : vector<1x4xf32>
    %14 = vector.extract_strided_slice %3 {offsets = [0, 2], sizes = [1, 1], strides = [1, 1]} : vector<1x4xf32> to vector<1x1xf32>
    %15 = vector.extract_strided_slice %4 {offsets = [2, 0], sizes = [1, 4], strides = [1, 1]} : vector<4x4xf32> to vector<1x4xf32>
    %16 = vector.broadcast %14 : vector<1x1xf32> to vector<1x4xf32>
    %17 = arith.mulf %16, %15 : vector<1x4xf32>
    %18 = arith.addf %13, %17 : vector<1x4xf32>
    %19 = vector.extract_strided_slice %3 {offsets = [0, 3], sizes = [1, 1], strides = [1, 1]} : vector<1x4xf32> to vector<1x1xf32>
    %20 = vector.extract_strided_slice %4 {offsets = [3, 0], sizes = [1, 4], strides = [1, 1]} : vector<4x4xf32> to vector<1x4xf32>
    %21 = vector.broadcast %19 : vector<1x1xf32> to vector<1x4xf32>
    %22 = arith.mulf %21, %20 : vector<1x4xf32>
    %23 = arith.addf %18, %22 : vector<1x4xf32>
    %24 = vector.shape_cast %23 : vector<1x4xf32> to vector<1x1x4xf32>
    %25 = vector.broadcast %24 : vector<1x1x4xf32> to vector<1x8x4xf32>
    %26 = arith.subf %0, %25 : vector<1x8x4xf32>
    %27 = arith.mulf %26, %26 : vector<1x8x4xf32>
    %cst_4 = arith.constant dense<0.000000e+00> : vector<1x4xf32>
    %28 = vector.multi_reduction <add>, %27, %cst_4 [1] : vector<1x8x4xf32> to vector<1x4xf32>
    %cst_5 = arith.constant 8.000000e+00 : f32
    %29 = vector.broadcast %cst_5 : f32 to vector<1x4xf32>
    %30 = arith.divf %28, %29 : vector<1x4xf32>
    %cst_6 = arith.constant 9.99999993E-9 : f32
    %31 = vector.broadcast %cst_6 : f32 to vector<1x4xf32>
    %32 = arith.addf %30, %31 : vector<1x4xf32>
    %33 = math.sqrt %32 : vector<1x4xf32>
    %c64 = arith.constant 64 : index
    %c0_7 = arith.constant 0 : index
    %34 = vector.load %arg2[%c64, %c0_7] : memref<80x256xf32, #tpu.memory_space<vmem>>, vector<4x4xf32>
    %35 = vector.extract_strided_slice %33 {offsets = [0, 0], sizes = [1, 1], strides = [1, 1]} : vector<1x4xf32> to vector<1x1xf32>
    %36 = vector.extract_strided_slice %34 {offsets = [0, 0], sizes = [1, 4], strides = [1, 1]} : vector<4x4xf32> to vector<1x4xf32>
    %37 = vector.broadcast %35 : vector<1x1xf32> to vector<1x4xf32>
    %38 = arith.mulf %37, %36 : vector<1x4xf32>
    %39 = vector.extract_strided_slice %33 {offsets = [0, 1], sizes = [1, 1], strides = [1, 1]} : vector<1x4xf32> to vector<1x1xf32>
    %40 = vector.extract_strided_slice %34 {offsets = [1, 0], sizes = [1, 4], strides = [1, 1]} : vector<4x4xf32> to vector<1x4xf32>
    %41 = vector.broadcast %39 : vector<1x1xf32> to vector<1x4xf32>
    %42 = arith.mulf %41, %40 : vector<1x4xf32>
    %43 = arith.addf %38, %42 : vector<1x4xf32>
    %44 = vector.extract_strided_slice %33 {offsets = [0, 2], sizes = [1, 1], strides = [1, 1]} : vector<1x4xf32> to vector<1x1xf32>
    %45 = vector.extract_strided_slice %34 {offsets = [2, 0], sizes = [1, 4], strides = [1, 1]} : vector<4x4xf32> to vector<1x4xf32>
    %46 = vector.broadcast %44 : vector<1x1xf32> to vector<1x4xf32>
    %47 = arith.mulf %46, %45 : vector<1x4xf32>
    %48 = arith.addf %43, %47 : vector<1x4xf32>
    %49 = vector.extract_strided_slice %33 {offsets = [0, 3], sizes = [1, 1], strides = [1, 1]} : vector<1x4xf32> to vector<1x1xf32>
    %50 = vector.extract_strided_slice %34 {offsets = [3, 0], sizes = [1, 4], strides = [1, 1]} : vector<4x4xf32> to vector<1x4xf32>
    %51 = vector.broadcast %49 : vector<1x1xf32> to vector<1x4xf32>
    %52 = arith.mulf %51, %50 : vector<1x4xf32>
    %53 = arith.addf %48, %52 : vector<1x4xf32>
    %cst_8 = arith.constant 9.99999993E-9 : f32
    %54 = vector.broadcast %cst_8 : f32 to vector<1x4xf32>
    %55 = arith.cmpf ole, %53, %54 : vector<1x4xf32>
    %cst_9 = arith.constant 1.000000e+00 : f32
    %56 = vector.broadcast %cst_9 : f32 to vector<1x4xf32>
    %57 = arith.select %55, %56, %53 : vector<1x4xi1>, vector<1x4xf32>
    %58 = tpu.reciprocal %57 {approx = true} : vector<1x4xf32> -> vector<1x4xf32>
    %59 = arith.subf %3, %23 : vector<1x4xf32>
    %60 = arith.mulf %59, %58 : vector<1x4xf32>
    %c72 = arith.constant 72 : index
    %c0_10 = arith.constant 0 : index
    %61 = vector.load %arg2[%c72, %c0_10] : memref<80x256xf32, #tpu.memory_space<vmem>>, vector<4x4xf32>
    %62 = vector.extract_strided_slice %60 {offsets = [0, 0], sizes = [1, 1], strides = [1, 1]} : vector<1x4xf32> to vector<1x1xf32>
    %63 = vector.extract_strided_slice %61 {offsets = [0, 0], sizes = [1, 4], strides = [1, 1]} : vector<4x4xf32> to vector<1x4xf32>
    %64 = vector.broadcast %62 : vector<1x1xf32> to vector<1x4xf32>
    %65 = arith.mulf %64, %63 : vector<1x4xf32>
    %66 = vector.extract_strided_slice %60 {offsets = [0, 1], sizes = [1, 1], strides = [1, 1]} : vector<1x4xf32> to vector<1x1xf32>
    %67 = vector.extract_strided_slice %61 {offsets = [1, 0], sizes = [1, 4], strides = [1, 1]} : vector<4x4xf32> to vector<1x4xf32>
    %68 = vector.broadcast %66 : vector<1x1xf32> to vector<1x4xf32>
    %69 = arith.mulf %68, %67 : vector<1x4xf32>
    %70 = arith.addf %65, %69 : vector<1x4xf32>
    %71 = vector.extract_strided_slice %60 {offsets = [0, 2], sizes = [1, 1], strides = [1, 1]} : vector<1x4xf32> to vector<1x1xf32>
    %72 = vector.extract_strided_slice %61 {offsets = [2, 0], sizes = [1, 4], strides = [1, 1]} : vector<4x4xf32> to vector<1x4xf32>
    %73 = vector.broadcast %71 : vector<1x1xf32> to vector<1x4xf32>
    %74 = arith.mulf %73, %72 : vector<1x4xf32>
    %75 = arith.addf %70, %74 : vector<1x4xf32>
    %76 = vector.extract_strided_slice %60 {offsets = [0, 3], sizes = [1, 1], strides = [1, 1]} : vector<1x4xf32> to vector<1x1xf32>
    %77 = vector.extract_strided_slice %61 {offsets = [3, 0], sizes = [1, 4], strides = [1, 1]} : vector<4x4xf32> to vector<1x4xf32>
    %78 = vector.broadcast %76 : vector<1x1xf32> to vector<1x4xf32>
    %79 = arith.mulf %78, %77 : vector<1x4xf32>
    %80 = arith.addf %75, %79 : vector<1x4xf32>
    %c48 = arith.constant 48 : index
    %c0_11 = arith.constant 0 : index
    %81 = vector.load %arg2[%c48, %c0_11] : memref<80x256xf32, #tpu.memory_space<vmem>>, vector<1x4xf32>
    %82 = arith.addf %80, %81 : vector<1x4xf32>
    %83 = arith.negf %82 : vector<1x4xf32>
    %84 = math.exp %83 : vector<1x4xf32>
    %cst_12 = arith.constant 1.000000e+00 : f32
    %85 = vector.broadcast %cst_12 : f32 to vector<1x4xf32>
    %86 = arith.addf %85, %84 : vector<1x4xf32>
    %87 = arith.divf %85, %86 : vector<1x4xf32>
    %88 = arith.mulf %58, %87 : vector<1x4xf32>
    %89 = vector.shape_cast %88 : vector<1x4xf32> to vector<1x1x4xf32>
    %90 = vector.broadcast %89 : vector<1x1x4xf32> to vector<1x8x4xf32>
    %91 = arith.mulf %26, %90 : vector<1x8x4xf32>
    %92 = vector.shape_cast %0 : vector<1x8x4xf32> to vector<1x32xf32>
    %93 = arith.truncf %92 : vector<1x32xf32> to vector<1x32xbf16>
    %94 = vector.shape_cast %91 : vector<1x8x4xf32> to vector<1x32xf32>
    %95 = arith.truncf %94 : vector<1x32xf32> to vector<1x32xbf16>
    %c0_13 = arith.constant 0 : index
    %c0_14 = arith.constant 0 : index
    %96 = vector.load %arg3[%c0_13, %c0_14] : memref<704x256xbf16, #tpu.memory_space<vmem>>, vector<32x256xbf16>
    %cst_15 = arith.constant dense<0.000000e+00> : vector<1x256xf32>
    %97 = tpu.matmul %93, %96, %cst_15 {dimension_numbers = #tpu.dot_dimension_numbers<[1], [0], [0], [1], [0, 0, 1, 1], [], []>} : vector<1x32xbf16>, vector<32x256xbf16>, vector<1x256xf32> -> vector<1x256xf32>
    %c0_16 = arith.constant 0 : index
    %c0_17 = arith.constant 0 : index
    %98 = vector.load %arg2[%c0_16, %c0_17] : memref<80x256xf32, #tpu.memory_space<vmem>>, vector<1x256xf32>
    %99 = arith.addf %97, %98 : vector<1x256xf32>
    %c32 = arith.constant 32 : index
    %c0_18 = arith.constant 0 : index
    %100 = vector.load %arg3[%c32, %c0_18] : memref<704x256xbf16, #tpu.memory_space<vmem>>, vector<32x8xbf16>
    %cst_19 = arith.constant dense<0.000000e+00> : vector<1x8xf32>
    %101 = tpu.matmul %95, %100, %cst_19 {dimension_numbers = #tpu.dot_dimension_numbers<[1], [0], [0], [1], [0, 0, 1, 1], [], []>} : vector<1x32xbf16>, vector<32x8xbf16>, vector<1x8xf32> -> vector<1x8xf32>
    %c24 = arith.constant 24 : index
    %c0_20 = arith.constant 0 : index
    %102 = vector.load %arg2[%c24, %c0_20] : memref<80x256xf32, #tpu.memory_space<vmem>>, vector<1x1xf32>
    %103 = vector.broadcast %102 : vector<1x1xf32> to vector<1x8xf32>
    %104 = arith.addf %101, %103 : vector<1x8xf32>
    %cst_21 = arith.constant 0.000000e+00 : f32
    %105 = vector.broadcast %cst_21 : f32 to vector<1x8xf32>
    %106 = arith.maximumf %104, %105 : vector<1x8xf32>
    %107 = arith.truncf %106 : vector<1x8xf32> to vector<1x8xbf16>
    %c96 = arith.constant 96 : index
    %c0_22 = arith.constant 0 : index
    %108 = vector.load %arg3[%c96, %c0_22] : memref<704x256xbf16, #tpu.memory_space<vmem>>, vector<8x256xbf16>
    %cst_23 = arith.constant dense<0.000000e+00> : vector<1x256xf32>
    %109 = tpu.matmul %107, %108, %cst_23 {dimension_numbers = #tpu.dot_dimension_numbers<[1], [0], [0], [1], [0, 0, 1, 1], [], []>} : vector<1x8xbf16>, vector<8x256xbf16>, vector<1x256xf32> -> vector<1x256xf32>
    %c64_24 = arith.constant 64 : index
    %c0_25 = arith.constant 0 : index
    %110 = vector.load %arg3[%c64_24, %c0_25] : memref<704x256xbf16, #tpu.memory_space<vmem>>, vector<32x256xbf16>
    %cst_26 = arith.constant dense<0.000000e+00> : vector<1x256xf32>
    %111 = tpu.matmul %95, %110, %cst_26 {dimension_numbers = #tpu.dot_dimension_numbers<[1], [0], [0], [1], [0, 0, 1, 1], [], []>} : vector<1x32xbf16>, vector<32x256xbf16>, vector<1x256xf32> -> vector<1x256xf32>
    %112 = arith.addf %109, %111 : vector<1x256xf32>
    %c8 = arith.constant 8 : index
    %c0_27 = arith.constant 0 : index
    %113 = vector.load %arg2[%c8, %c0_27] : memref<80x256xf32, #tpu.memory_space<vmem>>, vector<1x256xf32>
    %114 = arith.addf %112, %113 : vector<1x256xf32>
    %cst_28 = arith.constant 0.000000e+00 : f32
    %115 = vector.broadcast %cst_28 : f32 to vector<1x256xf32>
    %116 = arith.maximumf %114, %115 : vector<1x256xf32>
    %117 = vector.extract_strided_slice %116 {offsets = [0, 224], sizes = [1, 32], strides = [1, 1]} : vector<1x256xf32> to vector<1x32xf32>
    %118 = arith.addf %116, %99 : vector<1x256xf32>
    %119 = math.tanh %118 : vector<1x256xf32>
    %120 = arith.truncf %119 : vector<1x256xf32> to vector<1x256xbf16>
    %c112 = arith.constant 112 : index
    %c0_29 = arith.constant 0 : index
    %121 = vector.load %arg3[%c112, %c0_29] : memref<704x256xbf16, #tpu.memory_space<vmem>>, vector<256x8xbf16>
    %cst_30 = arith.constant dense<0.000000e+00> : vector<1x8xf32>
    %122 = tpu.matmul %120, %121, %cst_30 {dimension_numbers = #tpu.dot_dimension_numbers<[1], [0], [0], [1], [0, 0, 1, 1], [], []>} : vector<1x256xbf16>, vector<256x8xbf16>, vector<1x8xf32> -> vector<1x8xf32>
    %c32_31 = arith.constant 32 : index
    %c0_32 = arith.constant 0 : index
    %123 = vector.load %arg2[%c32_31, %c0_32] : memref<80x256xf32, #tpu.memory_space<vmem>>, vector<1x1xf32>
    %124 = vector.broadcast %123 : vector<1x1xf32> to vector<1x8xf32>
    %125 = arith.addf %122, %124 : vector<1x8xf32>
    %cst_33 = arith.constant 0.000000e+00 : f32
    %126 = vector.broadcast %cst_33 : f32 to vector<1x8xf32>
    %127 = arith.maximumf %125, %126 : vector<1x8xf32>
    %128 = arith.truncf %127 : vector<1x8xf32> to vector<1x8xbf16>
    %c624 = arith.constant 624 : index
    %c0_34 = arith.constant 0 : index
    %129 = vector.load %arg3[%c624, %c0_34] : memref<704x256xbf16, #tpu.memory_space<vmem>>, vector<8x256xbf16>
    %cst_35 = arith.constant dense<0.000000e+00> : vector<1x256xf32>
    %130 = tpu.matmul %128, %129, %cst_35 {dimension_numbers = #tpu.dot_dimension_numbers<[1], [0], [0], [1], [0, 0, 1, 1], [], []>} : vector<1x8xbf16>, vector<8x256xbf16>, vector<1x256xf32> -> vector<1x256xf32>
    %c368 = arith.constant 368 : index
    %c0_36 = arith.constant 0 : index
    %131 = vector.load %arg3[%c368, %c0_36] : memref<704x256xbf16, #tpu.memory_space<vmem>>, vector<256x256xbf16>
    %cst_37 = arith.constant dense<0.000000e+00> : vector<1x256xf32>
    %132 = tpu.matmul %120, %131, %cst_37 {dimension_numbers = #tpu.dot_dimension_numbers<[1], [0], [0], [1], [0, 0, 1, 1], [], []>} : vector<1x256xbf16>, vector<256x256xbf16>, vector<1x256xf32> -> vector<1x256xf32>
    %133 = arith.addf %130, %132 : vector<1x256xf32>
    %c16 = arith.constant 16 : index
    %c0_38 = arith.constant 0 : index
    %134 = vector.load %arg2[%c16, %c0_38] : memref<80x256xf32, #tpu.memory_space<vmem>>, vector<1x256xf32>
    %135 = arith.addf %133, %134 : vector<1x256xf32>
    %cst_39 = arith.constant 0.000000e+00 : f32
    %136 = vector.broadcast %cst_39 : f32 to vector<1x256xf32>
    %137 = arith.maximumf %135, %136 : vector<1x256xf32>
    %138 = vector.extract_strided_slice %137 {offsets = [0, 224], sizes = [1, 32], strides = [1, 1]} : vector<1x256xf32> to vector<1x32xf32>
    %139 = tpu.concatenate %117, %138 in 1 : vector<1x32xf32>, vector<1x32xf32> -> vector<1x64xf32>
    %140 = arith.truncf %139 : vector<1x64xf32> to vector<1x64xbf16>
    %c640 = arith.constant 640 : index
    %c0_40 = arith.constant 0 : index
    %141 = vector.load %arg3[%c640, %c0_40] : memref<704x256xbf16, #tpu.memory_space<vmem>>, vector<64x128xbf16>
    %cst_41 = arith.constant dense<0.000000e+00> : vector<1x128xf32>
    %142 = tpu.matmul %140, %141, %cst_41 {dimension_numbers = #tpu.dot_dimension_numbers<[1], [0], [0], [1], [0, 0, 1, 1], [], []>} : vector<1x64xbf16>, vector<64x128xbf16>, vector<1x128xf32> -> vector<1x128xf32>
    %c40 = arith.constant 40 : index
    %c0_42 = arith.constant 0 : index
    %143 = vector.load %arg2[%c40, %c0_42] : memref<80x256xf32, #tpu.memory_space<vmem>>, vector<1x128xf32>
    %144 = arith.addf %142, %143 : vector<1x128xf32>
    %c0_43 = arith.constant 0 : index
    %c0_44 = arith.constant 0 : index
    %c0_45 = arith.constant 0 : index
    %145 = vector.load %arg4[%c0_43, %c0_44, %c0_45] : memref<1x1x128xf32, #tpu.memory_space<vmem>>, vector<1x1x128xf32>
    %146 = vector.shape_cast %145 : vector<1x1x128xf32> to vector<1x128xf32>
    %147 = vector.shape_cast %144 : vector<1x128xf32> to vector<1x1x128xf32>
    tpu.vector_store %arg4[%c0_43, %c0_44, %c0_45], %147 {strides = array<i32>} : memref<1x1x128xf32, #tpu.memory_space<vmem>>, vector<1x1x128xf32>,
    return
  }
  func.func @transform_0(%arg0: i32) -> (i32, i32, i32) {
    %c0_i32 = arith.constant 0 : i32
    %c0_i32_0 = arith.constant 0 : i32
    %c0_i32_1 = arith.constant 0 : i32
    return %arg0, %c0_i32, %c0_i32_0 : i32, i32, i32
  }
  func.func @transform_1(%arg0: i32) -> (i32, i32) {
    %c0_i32 = arith.constant 0 : i32
    %c0_i32_0 = arith.constant 0 : i32
    %c0_i32_1 = arith.constant 0 : i32
    return %c0_i32, %c0_i32_0 : i32, i32
  }
  func.func @transform_2(%arg0: i32) -> (i32, i32) {
    %c0_i32 = arith.constant 0 : i32
    %c0_i32_0 = arith.constant 0 : i32
    %c0_i32_1 = arith.constant 0 : i32
    return %c0_i32, %c0_i32_0 : i32, i32
  }
  func.func @transform_3(%arg0: i32) -> (i32, i32, i32) {
    %c0_i32 = arith.constant 0 : i32
    %c0_i32_0 = arith.constant 0 : i32
    %c0_i32_1 = arith.constant 0 : i32
    return %arg0, %c0_i32, %c0_i32_0 : i32, i32, i32
  }
}

module attributes {stable_mosaic.version = 11 : i64} {
  func.func @kernel(%arg0: i32, %arg1: memref<1x8x4xf32, #tpu.memory_space<vmem>>, %arg2: memref<80x256xf32, #tpu.memory_space<vmem>>, %arg3: memref<704x256xbf16, #tpu.memory_space<vmem>>, %arg4: memref<1x1x128xf32, #tpu.memory_space<vmem>>) attributes {dimension_semantics = [#tpu.dimension_semantics<parallel>], iteration_bounds = array<i64: 2>, scalar_prefetch = 0 : i64, scratch_operands = 0 : i64, tpu.core_type = #tpu.core_type<tc>, window_params = [{transform_indices = @transform_0, window_bounds = array<i64: 1, 8, 4>}, {pipeline_mode = #tpu.pipeline_mode<synchronous>, transform_indices = @transform_1, window_bounds = array<i64: 80, 256>}, {pipeline_mode = #tpu.pipeline_mode<synchronous>, transform_indices = @transform_2, window_bounds = array<i64: 704, 256>}, {transform_indices = @transform_3, window_bounds = array<i64: 1, 1, 128>}]} {
    %c0 = arith.constant 0 : index
    %c0_0 = arith.constant 0 : index
    %c0_1 = arith.constant 0 : index
    %0 = vector.load %arg1[%c0, %c0_0, %c0_1] : memref<1x8x4xf32, #tpu.memory_space<vmem>>, vector<1x8x4xf32>
    %cst = arith.constant dense<0.000000e+00> : vector<1x4xf32>
    %1 = vector.multi_reduction <add>, %0, %cst [1] : vector<1x8x4xf32> to vector<1x4xf32>
    %cst_2 = arith.constant 8.000000e+00 : f32
    %2 = vector.broadcast %cst_2 : f32 to vector<1x4xf32>
    %3 = arith.divf %1, %2 : vector<1x4xf32>
    %c56 = arith.constant 56 : index
    %c0_3 = arith.constant 0 : index
    %4 = vector.load %arg2[%c56, %c0_3] : memref<80x256xf32, #tpu.memory_space<vmem>>, vector<4x4xf32>
    %5 = vector.extract_strided_slice %3 {offsets = [0, 0], sizes = [1, 1], strides = [1, 1]} : vector<1x4xf32> to vector<1x1xf32>
    %6 = vector.extract_strided_slice %4 {offsets = [0, 0], sizes = [1, 4], strides = [1, 1]} : vector<4x4xf32> to vector<1x4xf32>
    %7 = vector.broadcast %5 : vector<1x1xf32> to vector<1x4xf32>
    %8 = arith.mulf %7, %6 : vector<1x4xf32>
    %9 = vector.extract_strided_slice %3 {offsets = [0, 1], sizes = [1, 1], strides = [1, 1]} : vector<1x4xf32> to vector<1x1xf32>
    %10 = vector.extract_strided_slice %4 {offsets = [1, 0], sizes = [1, 4], strides = [1, 1]} : vector<4x4xf32> to vector<1x4xf32>
    %11 = vector.broadcast %9 : vector<1x1xf32> to vector<1x4xf32>
    %12 = arith.mulf %11, %10 : vector<1x4xf32>
    %13 = arith.addf %8, %12 : vector<1x4xf32>
    %14 = vector.extract_strided_slice %3 {offsets = [0, 2], sizes = [1, 1], strides = [1, 1]} : vector<1x4xf32> to vector<1x1xf32>
    %15 = vector.extract_strided_slice %4 {offsets = [2, 0], sizes = [1, 4], strides = [1, 1]} : vector<4x4xf32> to vector<1x4xf32>
    %16 = vector.broadcast %14 : vector<1x1xf32> to vector<1x4xf32>
    %17 = arith.mulf %16, %15 : vector<1x4xf32>
    %18 = arith.addf %13, %17 : vector<1x4xf32>
    %19 = vector.extract_strided_slice %3 {offsets = [0, 3], sizes = [1, 1], strides = [1, 1]} : vector<1x4xf32> to vector<1x1xf32>
    %20 = vector.extract_strided_slice %4 {offsets = [3, 0], sizes = [1, 4], strides = [1, 1]} : vector<4x4xf32> to vector<1x4xf32>
    %21 = vector.broadcast %19 : vector<1x1xf32> to vector<1x4xf32>
    %22 = arith.mulf %21, %20 : vector<1x4xf32>
    %23 = arith.addf %18, %22 : vector<1x4xf32>
    %24 = vector.shape_cast %23 : vector<1x4xf32> to vector<1x1x4xf32>
    %25 = vector.broadcast %24 : vector<1x1x4xf32> to vector<1x8x4xf32>
    %26 = arith.subf %0, %25 : vector<1x8x4xf32>
    %27 = arith.mulf %26, %26 : vector<1x8x4xf32>
    %cst_4 = arith.constant dense<0.000000e+00> : vector<1x4xf32>
    %28 = vector.multi_reduction <add>, %27, %cst_4 [1] : vector<1x8x4xf32> to vector<1x4xf32>
    %cst_5 = arith.constant 8.000000e+00 : f32
    %29 = vector.broadcast %cst_5 : f32 to vector<1x4xf32>
    %30 = arith.divf %28, %29 : vector<1x4xf32>
    %cst_6 = arith.constant 9.99999993E-9 : f32
    %31 = vector.broadcast %cst_6 : f32 to vector<1x4xf32>
    %32 = arith.addf %30, %31 : vector<1x4xf32>
    %33 = math.sqrt %32 : vector<1x4xf32>
    %c64 = arith.constant 64 : index
    %c0_7 = arith.constant 0 : index
    %34 = vector.load %arg2[%c64, %c0_7] : memref<80x256xf32, #tpu.memory_space<vmem>>, vector<4x4xf32>
    %35 = vector.extract_strided_slice %33 {offsets = [0, 0], sizes = [1, 1], strides = [1, 1]} : vector<1x4xf32> to vector<1x1xf32>
    %36 = vector.extract_strided_slice %34 {offsets = [0, 0], sizes = [1, 4], strides = [1, 1]} : vector<4x4xf32> to vector<1x4xf32>
    %37 = vector.broadcast %35 : vector<1x1xf32> to vector<1x4xf32>
    %38 = arith.mulf %37, %36 : vector<1x4xf32>
    %39 = vector.extract_strided_slice %33 {offsets = [0, 1], sizes = [1, 1], strides = [1, 1]} : vector<1x4xf32> to vector<1x1xf32>
    %40 = vector.extract_strided_slice %34 {offsets = [1, 0], sizes = [1, 4], strides = [1, 1]} : vector<4x4xf32> to vector<1x4xf32>
    %41 = vector.broadcast %39 : vector<1x1xf32> to vector<1x4xf32>
    %42 = arith.mulf %41, %40 : vector<1x4xf32>
    %43 = arith.addf %38, %42 : vector<1x4xf32>
    %44 = vector.extract_strided_slice %33 {offsets = [0, 2], sizes = [1, 1], strides = [1, 1]} : vector<1x4xf32> to vector<1x1xf32>
    %45 = vector.extract_strided_slice %34 {offsets = [2, 0], sizes = [1, 4], strides = [1, 1]} : vector<4x4xf32> to vector<1x4xf32>
    %46 = vector.broadcast %44 : vector<1x1xf32> to vector<1x4xf32>
    %47 = arith.mulf %46, %45 : vector<1x4xf32>
    %48 = arith.addf %43, %47 : vector<1x4xf32>
    %49 = vector.extract_strided_slice %33 {offsets = [0, 3], sizes = [1, 1], strides = [1, 1]} : vector<1x4xf32> to vector<1x1xf32>
    %50 = vector.extract_strided_slice %34 {offsets = [3, 0], sizes = [1, 4], strides = [1, 1]} : vector<4x4xf32> to vector<1x4xf32>
    %51 = vector.broadcast %49 : vector<1x1xf32> to vector<1x4xf32>
    %52 = arith.mulf %51, %50 : vector<1x4xf32>
    %53 = arith.addf %48, %52 : vector<1x4xf32>
    %cst_8 = arith.constant 9.99999993E-9 : f32
    %54 = vector.broadcast %cst_8 : f32 to vector<1x4xf32>
    %55 = arith.cmpf ole, %53, %54 : vector<1x4xf32>
    %cst_9 = arith.constant 1.000000e+00 : f32
    %56 = vector.broadcast %cst_9 : f32 to vector<1x4xf32>
    %57 = arith.select %55, %56, %53 : vector<1x4xi1>, vector<1x4xf32>
    %58 = tpu.reciprocal %57 {approx = true} : vector<1x4xf32> -> vector<1x4xf32>
    %59 = arith.subf %3, %23 : vector<1x4xf32>
    %60 = arith.mulf %59, %58 : vector<1x4xf32>
    %c72 = arith.constant 72 : index
    %c0_10 = arith.constant 0 : index
    %61 = vector.load %arg2[%c72, %c0_10] : memref<80x256xf32, #tpu.memory_space<vmem>>, vector<4x4xf32>
    %62 = vector.extract_strided_slice %60 {offsets = [0, 0], sizes = [1, 1], strides = [1, 1]} : vector<1x4xf32> to vector<1x1xf32>
    %63 = vector.extract_strided_slice %61 {offsets = [0, 0], sizes = [1, 4], strides = [1, 1]} : vector<4x4xf32> to vector<1x4xf32>
    %64 = vector.broadcast %62 : vector<1x1xf32> to vector<1x4xf32>
    %65 = arith.mulf %64, %63 : vector<1x4xf32>
    %66 = vector.extract_strided_slice %60 {offsets = [0, 1], sizes = [1, 1], strides = [1, 1]} : vector<1x4xf32> to vector<1x1xf32>
    %67 = vector.extract_strided_slice %61 {offsets = [1, 0], sizes = [1, 4], strides = [1, 1]} : vector<4x4xf32> to vector<1x4xf32>
    %68 = vector.broadcast %66 : vector<1x1xf32> to vector<1x4xf32>
    %69 = arith.mulf %68, %67 : vector<1x4xf32>
    %70 = arith.addf %65, %69 : vector<1x4xf32>
    %71 = vector.extract_strided_slice %60 {offsets = [0, 2], sizes = [1, 1], strides = [1, 1]} : vector<1x4xf32> to vector<1x1xf32>
    %72 = vector.extract_strided_slice %61 {offsets = [2, 0], sizes = [1, 4], strides = [1, 1]} : vector<4x4xf32> to vector<1x4xf32>
    %73 = vector.broadcast %71 : vector<1x1xf32> to vector<1x4xf32>
    %74 = arith.mulf %73, %72 : vector<1x4xf32>
    %75 = arith.addf %70, %74 : vector<1x4xf32>
    %76 = vector.extract_strided_slice %60 {offsets = [0, 3], sizes = [1, 1], strides = [1, 1]} : vector<1x4xf32> to vector<1x1xf32>
    %77 = vector.extract_strided_slice %61 {offsets = [3, 0], sizes = [1, 4], strides = [1, 1]} : vector<4x4xf32> to vector<1x4xf32>
    %78 = vector.broadcast %76 : vector<1x1xf32> to vector<1x4xf32>
    %79 = arith.mulf %78, %77 : vector<1x4xf32>
    %80 = arith.addf %75, %79 : vector<1x4xf32>
    %c48 = arith.constant 48 : index
    %c0_11 = arith.constant 0 : index
    %81 = vector.load %arg2[%c48, %c0_11] : memref<80x256xf32, #tpu.memory_space<vmem>>, vector<1x4xf32>
    %82 = arith.addf %80, %81 : vector<1x4xf32>
    %83 = arith.negf %82 : vector<1x4xf32>
    %84 = math.exp %83 : vector<1x4xf32>
    %cst_12 = arith.constant 1.000000e+00 : f32
    %85 = vector.broadcast %cst_12 : f32 to vector<1x4xf32>
    %86 = arith.addf %85, %84 : vector<1x4xf32>
    %87 = arith.divf %85, %86 : vector<1x4xf32>
    %88 = arith.mulf %58, %87 : vector<1x4xf32>
    %89 = vector.shape_cast %88 : vector<1x4xf32> to vector<1x1x4xf32>
    %90 = vector.broadcast %89 : vector<1x1x4xf32> to vector<1x8x4xf32>
    %91 = arith.mulf %26, %90 : vector<1x8x4xf32>
    %92 = vector.shape_cast %0 : vector<1x8x4xf32> to vector<1x32xf32>
    %93 = arith.truncf %92 : vector<1x32xf32> to vector<1x32xbf16>
    %94 = vector.shape_cast %91 : vector<1x8x4xf32> to vector<1x32xf32>
    %95 = arith.truncf %94 : vector<1x32xf32> to vector<1x32xbf16>
    %c0_13 = arith.constant 0 : index
    %c0_14 = arith.constant 0 : index
    %96 = vector.load %arg3[%c0_13, %c0_14] : memref<704x256xbf16, #tpu.memory_space<vmem>>, vector<32x256xbf16>
    %cst_15 = arith.constant dense<0.000000e+00> : vector<1x256xf32>
    %97 = tpu.matmul %93, %96, %cst_15 {dimension_numbers = #tpu.dot_dimension_numbers<[1], [0], [0], [1], [0, 0, 1, 1], [], []>} : vector<1x32xbf16>, vector<32x256xbf16>, vector<1x256xf32> -> vector<1x256xf32>
    %c0_16 = arith.constant 0 : index
    %c0_17 = arith.constant 0 : index
    %98 = vector.load %arg2[%c0_16, %c0_17] : memref<80x256xf32, #tpu.memory_space<vmem>>, vector<1x256xf32>
    %99 = arith.addf %97, %98 : vector<1x256xf32>
    %c32 = arith.constant 32 : index
    %c0_18 = arith.constant 0 : index
    %100 = vector.load %arg3[%c32, %c0_18] : memref<704x256xbf16, #tpu.memory_space<vmem>>, vector<32x8xbf16>
    %cst_19 = arith.constant dense<0.000000e+00> : vector<1x8xf32>
    %101 = tpu.matmul %95, %100, %cst_19 {dimension_numbers = #tpu.dot_dimension_numbers<[1], [0], [0], [1], [0, 0, 1, 1], [], []>} : vector<1x32xbf16>, vector<32x8xbf16>, vector<1x8xf32> -> vector<1x8xf32>
    %c24 = arith.constant 24 : index
    %c0_20 = arith.constant 0 : index
    %102 = vector.load %arg2[%c24, %c0_20] : memref<80x256xf32, #tpu.memory_space<vmem>>, vector<1x1xf32>
    %103 = vector.broadcast %102 : vector<1x1xf32> to vector<1x8xf32>
    %104 = arith.addf %101, %103 : vector<1x8xf32>
    %cst_21 = arith.constant 0.000000e+00 : f32
    %105 = vector.broadcast %cst_21 : f32 to vector<1x8xf32>
    %106 = arith.maximumf %104, %105 : vector<1x8xf32>
    %107 = arith.truncf %106 : vector<1x8xf32> to vector<1x8xbf16>
    %c96 = arith.constant 96 : index
    %c0_22 = arith.constant 0 : index
    %108 = vector.load %arg3[%c96, %c0_22] : memref<704x256xbf16, #tpu.memory_space<vmem>>, vector<8x256xbf16>
    %cst_23 = arith.constant dense<0.000000e+00> : vector<1x256xf32>
    %109 = tpu.matmul %107, %108, %cst_23 {dimension_numbers = #tpu.dot_dimension_numbers<[1], [0], [0], [1], [0, 0, 1, 1], [], []>} : vector<1x8xbf16>, vector<8x256xbf16>, vector<1x256xf32> -> vector<1x256xf32>
    %c64_24 = arith.constant 64 : index
    %c0_25 = arith.constant 0 : index
    %110 = vector.load %arg3[%c64_24, %c0_25] : memref<704x256xbf16, #tpu.memory_space<vmem>>, vector<32x256xbf16>
    %cst_26 = arith.constant dense<0.000000e+00> : vector<1x256xf32>
    %111 = tpu.matmul %95, %110, %cst_26 {dimension_numbers = #tpu.dot_dimension_numbers<[1], [0], [0], [1], [0, 0, 1, 1], [], []>} : vector<1x32xbf16>, vector<32x256xbf16>, vector<1x256xf32> -> vector<1x256xf32>
    %112 = arith.addf %109, %111 : vector<1x256xf32>
    %c8 = arith.constant 8 : index
    %c0_27 = arith.constant 0 : index
    %113 = vector.load %arg2[%c8, %c0_27] : memref<80x256xf32, #tpu.memory_space<vmem>>, vector<1x256xf32>
    %114 = arith.addf %112, %113 : vector<1x256xf32>
    %cst_28 = arith.constant 0.000000e+00 : f32
    %115 = vector.broadcast %cst_28 : f32 to vector<1x256xf32>
    %116 = arith.maximumf %114, %115 : vector<1x256xf32>
    %117 = vector.extract_strided_slice %116 {offsets = [0, 224], sizes = [1, 32], strides = [1, 1]} : vector<1x256xf32> to vector<1x32xf32>
    %118 = arith.addf %116, %99 : vector<1x256xf32>
    %119 = math.tanh %118 : vector<1x256xf32>
    %120 = arith.truncf %119 : vector<1x256xf32> to vector<1x256xbf16>
    %c112 = arith.constant 112 : index
    %c0_29 = arith.constant 0 : index
    %121 = vector.load %arg3[%c112, %c0_29] : memref<704x256xbf16, #tpu.memory_space<vmem>>, vector<256x8xbf16>
    %cst_30 = arith.constant dense<0.000000e+00> : vector<1x8xf32>
    %122 = tpu.matmul %120, %121, %cst_30 {dimension_numbers = #tpu.dot_dimension_numbers<[1], [0], [0], [1], [0, 0, 1, 1], [], []>} : vector<1x256xbf16>, vector<256x8xbf16>, vector<1x8xf32> -> vector<1x8xf32>
    %c32_31 = arith.constant 32 : index
    %c0_32 = arith.constant 0 : index
    %123 = vector.load %arg2[%c32_31, %c0_32] : memref<80x256xf32, #tpu.memory_space<vmem>>, vector<1x1xf32>
    %124 = vector.broadcast %123 : vector<1x1xf32> to vector<1x8xf32>
    %125 = arith.addf %122, %124 : vector<1x8xf32>
    %cst_33 = arith.constant 0.000000e+00 : f32
    %126 = vector.broadcast %cst_33 : f32 to vector<1x8xf32>
    %127 = arith.maximumf %125, %126 : vector<1x8xf32>
    %128 = arith.truncf %127 : vector<1x8xf32> to vector<1x8xbf16>
    %c624 = arith.constant 624 : index
    %c0_34 = arith.constant 0 : index
    %129 = vector.load %arg3[%c624, %c0_34] : memref<704x256xbf16, #tpu.memory_space<vmem>>, vector<8x256xbf16>
    %cst_35 = arith.constant dense<0.000000e+00> : vector<1x256xf32>
    %130 = tpu.matmul %128, %129, %cst_35 {dimension_numbers = #tpu.dot_dimension_numbers<[1], [0], [0], [1], [0, 0, 1, 1], [], []>} : vector<1x8xbf16>, vector<8x256xbf16>, vector<1x256xf32> -> vector<1x256xf32>
    %c368 = arith.constant 368 : index
    %c0_36 = arith.constant 0 : index
    %131 = vector.load %arg3[%c368, %c0_36] : memref<704x256xbf16, #tpu.memory_space<vmem>>, vector<256x256xbf16>
    %cst_37 = arith.constant dense<0.000000e+00> : vector<1x256xf32>
    %132 = tpu.matmul %120, %131, %cst_37 {dimension_numbers = #tpu.dot_dimension_numbers<[1], [0], [0], [1], [0, 0, 1, 1], [], []>} : vector<1x256xbf16>, vector<256x256xbf16>, vector<1x256xf32> -> vector<1x256xf32>
    %133 = arith.addf %130, %132 : vector<1x256xf32>
    %c16 = arith.constant 16 : index
    %c0_38 = arith.constant 0 : index
    %134 = vector.load %arg2[%c16, %c0_38] : memref<80x256xf32, #tpu.memory_space<vmem>>, vector<1x256xf32>
    %135 = arith.addf %133, %134 : vector<1x256xf32>
    %cst_39 = arith.constant 0.000000e+00 : f32
    %136 = vector.broadcast %cst_39 : f32 to vector<1x256xf32>
    %137 = arith.maximumf %135, %136 : vector<1x256xf32>
    %138 = vector.extract_strided_slice %137 {offsets = [0, 224], sizes = [1, 32], strides = [1, 1]} : vector<1x256xf32> to vector<1x32xf32>
    %139 = tpu.concatenate %117, %138 in 1 : vector<1x32xf32>, vector<1x32xf32> -> vector<1x64xf32>
    %140 = arith.truncf %139 : vector<1x64xf32> to vector<1x64xbf16>
    %c640 = arith.constant 640 : index
    %c0_40 = arith.constant 0 : index
    %141 = vector.load %arg3[%c640, %c0_40] : memref<704x256xbf16, #tpu.memory_space<vmem>>, vector<64x128xbf16>
    %cst_41 = arith.constant dense<0.000000e+00> : vector<1x128xf32>
    %142 = tpu.matmul %140, %141, %cst_41 {dimension_numbers = #tpu.dot_dimension_numbers<[1], [0], [0], [1], [0, 0, 1, 1], [], []>} : vector<1x64xbf16>, vector<64x128xbf16>, vector<1x128xf32> -> vector<1x128xf32>
    %c40 = arith.constant 40 : index
    %c0_42 = arith.constant 0 : index
    %143 = vector.load %arg2[%c40, %c0_42] : memref<80x256xf32, #tpu.memory_space<vmem>>, vector<1x128xf32>
    %144 = arith.addf %142, %143 : vector<1x128xf32>
    %c0_43 = arith.constant 0 : index
    %c0_44 = arith.constant 0 : index
    %c0_45 = arith.constant 0 : index
    %145 = vector.load %arg4[%c0_43, %c0_44, %c0_45] : memref<1x1x128xf32, #tpu.memory_space<vmem>>, vector<1x1x128xf32>
    %146 = vector.shape_cast %145 : vector<1x1x128xf32> to vector<1x128xf32>
    %147 = vector.shape_cast %144 : vector<1x128xf32> to vector<1x1x128xf32>
    tpu.vector_store %arg4[%c0_43, %c0_44, %c0_45], %147 {strides = array<i32>} : memref<1x1x128xf32, #tpu.memory_space<vmem>>, vector<1x1x128xf32>,
    return
  }
  func.func @transform_0(%arg0: i32) -> (i32, i32, i32) {
    %c0_i32 = arith.constant 0 : i32
    %c0_i32_0 = arith.constant 0 : i32
    %c0_i32_1 = arith.constant 0 : i32
    return %arg0, %c0_i32, %c0_i32_0 : i32, i32, i32
  }
  func.func @transform_1(%arg0: i32) -> (i32, i32) {
    %c0_i32 = arith.constant 0 : i32
    %c0_i32_0 = arith.constant 0 : i32
    %c0_i32_1 = arith.constant 0 : i32
    return %c0_i32, %c0_i32_0 : i32, i32
  }
  func.func @transform_2(%arg0: i32) -> (i32, i32) {
    %c0_i32 = arith.constant 0 : i32
    %c0_i32_0 = arith.constant 0 : i32
    %c0_i32_1 = arith.constant 0 : i32
    return %c0_i32, %c0_i32_0 : i32, i32
  }
  func.func @transform_3(%arg0: i32) -> (i32, i32, i32) {
    %c0_i32 = arith.constant 0 : i32
    %c0_i32_0 = arith.constant 0 : i32
    %c0_i32_1 = arith.constant 0 : i32
    return %arg0, %c0_i32, %c0_i32_0 : i32, i32, i32
  }
}

</mosaic_0001>

<bundles_post_ra>
// kernel: tpu_custom_call.1
= control target key start
LH: loop header
LB: loop body
LE: loop exit
PB: predicated region body
PF: predicated region fallthrough
CT: control target
= control target key end

     0   :  { %8 = vsyncpa [#allocation3], 0  ;;  %s2267_s0 = inlined_call_operand.vmem [shape: f32[2,8,4], index: 0, kind: input, shape index: {}]   ;;  %s2268_s1 = inlined_call_operand.hbm [shape: f32[80,256], index: 1, kind: input, shape index: {}]   ;;  %s2269_s2 = inlined_call_operand.hbm [shape: bf16[704,256], index: 2, kind: input, shape index: {}]   ;;  %s2270_s3 = inlined_call_operand.hbm [shape: f32[2,1,128], index: 3, kind: output, shape index: {}]  }
   0x1   :  { %9 = vsyncpa [#allocation6], 0 }
   0x2   :  { %10 = vsyncpa [#allocation4], 0 }
   0x3   :  { %12 = vsyncpa [#allocation4 + $0x1], 0  ;;  %s1969_s12 = smov 0   ;;  %s1971_s13 = smov 0  }
   0x4   :  { %s1973_s14 = smov 0   ;;  %s1975_s15 = smov 0  }
   0x5 LB: > { %s1990_s16 = sadd.s32 4294967295, %s1923_s15   ;;  %s1468_s17 = sadd.s32 4294967294, %s1923_s15   ;;  %s1923_s15 = sphi %s1975_s15, %s2288_s15   ;;  %s1919_s14 = sphi %s1973_s14, %s2287_s14   ;;  %s1915_s13 = sphi %s1971_s13, %s2286_s13   ;;  %s1911_s12 = sphi %s1969_s12, %s2285_s12  }
   0x6   : > { %s1994_s18 = sadd.s32 1, %s1923_s15   ;;  %s93_s19 = sadd.s32 1, %s1919_s14 }
   0x7   : > { %s90_s20 = ssub.s32 %s1923_s15, %s1994_s18  ;;  %p103_p0 = scmp.ne.s32.totalorder %s1919_s14, %s1915_s13 }
   0x8   : > { %p91_p1 = scmp.eq.s32.totalorder %s90_s20, 0  ;;  %p104_p2 = scmp.eq.s32.totalorder %s1990_s16, 1 }
   0x9   : > { %p109_p3 = scmp.ne.s32.totalorder %s1915_s13, %s1911_s12  ;;  %p110_p4 = scmp.eq.s32.totalorder %s1468_s17, 1 }
   0xa   : > { %s2005_s21 = scalar_select %p91_p1, %s1919_s14, %s93_s19  }
   0xb   : > { %p2007_p5 = por %p104_p2, %p103_p0  ;;  %p2011_p6 = por %p110_p4, %p109_p3 }
   0xc   : > { %p1469_p7 = scmp.ge.s32.totalorder %s1923_s15, 1  ;;  %p117_p8 = scmp.lt.s32.totalorder %s1923_s15, 3 }
   0xd   : > { %s2274_s22 = scalar_select %p2007_p5, 1, 0 }
   0xe   : > { %s2275_s23 = scalar_select %p2011_p6, 1, 0 }
   0xf   : > { %p2271_p9 = scmp.eq.s32.totalorder %s1990_s16, 0  ;;  %p2018_p10 = pnand %p1469_p7, %p117_p8 }
  0x10   : > { %s1925_s25 = smov [#allocation2]   ;;  %s1926_s28 = smov [#allocation5]  }
  0x11   : > { %s2276_s24 = scalar_select %p2018_p10, 1, 0 }
  0x12   : > { %s129_s26 = sshll.u32 %s1925_s25, 4  ;;  %p1615_p11 = pneg %p2018_p10  ;;  %s130_s26 = int_to_ptr.vmem [resolvable:$true] %s129_s26 }
  0x13   : > { %s142_s29 = sshll.u32 %s1926_s28, 4  ;;  %s1797_s5 = scalar_lea.hbm %s2268_s1, 2560  ;;  %s2030_s29 = int_to_ptr.vmem [resolvable:$true] %s142_s29 }
  0x14   : > { %p2026_p12 = pnand %p2271_p9, %p1615_p11  ;;  %p1798_p13 = scmp.ne.s32.totalorder %s2268_s1, %s1797_s5 }
  0x15   : > { %p1804_p3 = scmp.lt.u32.totalorder %s1797_s5, %s2268_s1 }
  0x16   : > { %p1799_p0 = pneg %p2026_p12 }
  0x18   : > { %p1800_p1 = pnand %p1799_p0, %p1798_p13 }
  0x1a   : > { %p1801_p2 = pneg %p1800_p1 }
  0x1c   : > { %p1806_p4 = pnand %p1804_p3, %p1801_p2 }
  0x1e   : > { %1809 = shalt.err (!%p1806_p4)
}
  0x1f   : > { %s1810_s10 = scalar_lea.vmem %s130_s26, 2560  ;;  %p1818_p9 = scmp.lt.s32.totalorder %s130_s26, %s130_s26 }
  0x20   : > { %p1811_p7 = scmp.ne.s32.totalorder %s130_s26, %s1810_s10  ;;  %p1819_p6 = scmp.lt.s32.totalorder %s1810_s10, %s1810_s10 }
  0x22   : > { %p1813_p8 = pnand %p1811_p7, %p1799_p0  ;;  %p1820_p5 = por %p1819_p6, %p1818_p9 }
  0x24   : > { %p1814_p11 = pneg %p1813_p8 }
  0x26   : > { %p1821_p10 = pnand %p1820_p5, %p1814_p11 }
  0x28   : > { %1824 = shalt.err (!%p1821_p10)
}
  0x29   : > { %s1927_s11 = smov 256   ;;  %s1928_s17 = smov 16  }
  0x2a   : > { %1618 = dma.hbm_to_vmem [thread:$0]  (!%p2026_p12), %s2268_s1, 2560, %s130_s26, [#allocation3], %s1927_s11, %s1927_s11, %s1928_s17  }
  0x2b   : > { %s1825_s30 = scalar_lea.hbm %s2269_s2, 11264 }
  0x2c   : > { %p1826_p13 = scmp.ne.s32.totalorder %s2269_s2, %s1825_s30  ;;  %p1832_p9 = scmp.lt.u32.totalorder %s1825_s30, %s2269_s2 }
  0x2e   : > { %p1828_p5 = pnand %p1826_p13, %p1799_p0 }
  0x30   : > { %p1829_p6 = pneg %p1828_p5 }
  0x32   : > { %p1834_p10 = pnand %p1832_p9, %p1829_p6 }
  0x34   : > { %1837 = shalt.err (!%p1834_p10)
}
  0x35   : > { %s1838_s26 = scalar_lea.vmem %s2030_s29, 11264  ;;  %p1846_p4 = scmp.lt.s32.totalorder %s2030_s29, %s2030_s29 }
  0x36   : > { %p1839_p1 = scmp.ne.s32.totalorder %s2030_s29, %s1838_s26  ;;  %p1847_p7 = scmp.lt.s32.totalorder %s1838_s26, %s1838_s26 }
  0x38   : > { %p1841_p2 = pnand %p1839_p1, %p1799_p0  ;;  %p1848_p8 = por %p1847_p7, %p1846_p4 }
  0x3a   : > { %p1842_p3 = pneg %p1841_p2 }
  0x3c   : > { %p1849_p11 = pnand %p1848_p8, %p1842_p3 }
  0x3e   : > { %1852 = shalt.err (!%p1849_p11)
}
  0x3f   : > { %s1929_s8 = smov 128   ;;  %s1930_s9 = smov 8  }
  0x40   : > { %1621 = dma.hbm_to_vmem [thread:$0]  (!%p2026_p12), %s2269_s2, 11264, %s2030_s29, [#allocation6], %s1929_s8, %s1929_s8, %s1930_s9  }
  0x41   : > { %p2278_p13 = scmp.ne.s32.totalorder %s2276_s24, 0 }
  0x42   : > { %p2279_p0 = scmp.eq.s32.totalorder (!%p2278_p13), %s1990_s16, 0 }
  0x43   : > { %165 = sbr.rel (%p2278_p13) target bundleno = 1986 (0x7c2), region = 32 }
  0x4a   : > { %1898 = dma.done.wait (%p2279_p0), [#allocation3], 2560   ;;  %p2280_p5 = pmov %p2279_p0 }
  0x4b   : > { %p2281_p6 = pmov %p2279_p0 }
  0x4c   : > { %1900 = vsyncadd (%p2280_p5), [#allocation3], 4294964736 }
  0x4d   : > { %1902 = dma.done.wait (%p2281_p6), [#allocation6], 11264   ;;  %p2282_p9 = pmov %p2279_p0 }
  0x4e   : > { %p191_p10 = scmp.lt.s32.totalorder %s1990_s16, 1  ;;  %v1931_v0 = vmov 1   ;;  %v1932_v1 = vmov 2   ;;  %v1933_v2 = vmov 0   ;;  %vm197_vm0 = vcmask 31744   ;;  %s1938_s20 = smov 4  }
  0x4f   : > { %1904 = vsyncadd (%p2282_p9), [#allocation6], 4294956032  ;;  %1686 = vset.pattern.permute.xlu0 %v1931_v0  ;;  %1688 = vset.pattern.permute.xlu1 %v1932_v1  ;;  %v1934_v12 = vmov 3   ;;  %v207_v13 = vld [vmem:[#allocation2 + $0x70] sm:$0xf]  ;;  %v241_v17 = vlaneseq  ;;  %s1939_s25 = smov 8  }
  0x50   : > { %s192_s24 = scalar_select %p191_p10, %s1990_s16, 1  ;;  %596 = vmatprep.mubr.bf16.mxu0 %v1933_v2  ;;  %v263_v48 = vld [vmem:[#allocation2 + $0x80] sm:$0xf]  ;;  %vm1940_vm4 = vmmov 0   ;;  %vm746_vm5 = vcmask 1043456   ;;  %vm426_vm6 = vcmask 64512  }
  0x51   : > { %v2110_v23 = vshrl.u32 %v241_v17, 7  ;;  %s1941_s28 = smov 12   ;;  %s1942_s30 = smov 16   ;;  %vm428_vm7 = vcmask 97280   ;;  %vm430_vm8 = vcmask 130048   ;;  %vm432_vm9 = vcmask 162816  }
  0x52   : > { %s1476_s27 = sshll.u32 %s192_s24, 3  ;;  %s1943_s4 = smov 20   ;;  %vm434_vm10 = vcmask 195584   ;;  %vm436_vm11 = vcmask 228352   ;;  %vm560_vm12 = vcmask 261120   ;;  %vm1333_vm13 = vcmask 523264  }
  0x53   : > { %s194_s19 = scalar_lea.vmem %s2267_s0, %s1476_s27  ;;  %v2113_v29 = vsub.s32 0, %v2110_v23  ;;  %s1944_s5 = smov 24  }
  0x54   : > { %v2097_v3 = vld [vmem:[%s194_s19] sm:$0xff]  ;;  %s1945_s6 = smov 28   ;;  %s1946_s7 = smov 32  }
  0x55   : > { %v198_v4 = vsel %vm197_vm0, %v2097_v3, 0.0  ;;  %s1947_s26 = smov 64   ;;  %s189_s8 = sand.u32 1, %s1915_s13  }
  0x56   : > { %v199_v5 = vrot.slane %v198_v4, 4  ;;  %s1552_s9 = sshll.u32 %s1990_s16, 4  ;;  %s190_s10 = scalar_lea.vmem [#allocation7], %s189_s8 }
  0x57   : > { %s1391_s11 = sshll.u32 %s190_s10, 4  ;;  %s2225_s29 = scalar_lea.hbm %s2270_s3, %s1552_s9  ;;  %s2227_s11 = int_to_ptr.vmem [resolvable:$true] %s1391_s11 }
  0x58   : > { %v200_v6 = vadd.f32 %v199_v5, %v198_v4  ;;  %s1379_s17 = scalar_lea.sflag [#allocation4], %s189_s8  ;;  %s1853_s16 = scalar_lea.vmem %s2227_s11, 16 }
  0x59   : > { %p1854_p12 = scmp.ne.s32.totalorder %s2227_s11, %s1853_s16  ;;  %p2283_p1 = scmp.ne.s32.totalorder %s2274_s22, 0 }
  0x5a   : > { %v201_v7 = vrot.slane %v200_v6, 2  ;;  %s1948_s19 = smov [#allocation7]  }
  0x5b   : > { %p1855_p2 = pnand %p1854_p12, %p2283_p1 }
  0x5c   : > { %v202_v8 = vadd.f32 %v201_v7, %v200_v6  ;;  %v1935_v6 = vmov 0.0  }
  0x5d   : > { %1585 = vmatprep.subr.bf16.mxu1 %v1935_v6  ;;  %1589 = vmatprep.mubr.msk.bf16.mxu1 %vm1940_vm4, %v1935_v6  ;;  %p1856_p3 = pneg %p1855_p2 }
  0x5e   : > { %v203_v9 = vrot.slane %v202_v8, 1 }
  0x60   : > { %v204_v10 = vadd.f32 %v203_v9, %v202_v8  ;;  %v302_v8 = vld [vmem:[#allocation2 + $0x90] sm:$0xf] }
  0x61   : > { %v314_v9 = vrot.slane %v302_v8, 1 }
  0x62   : > { %v2101_v11 = vmul.f32 0.125, %v204_v10  ;;  %v322_v10 = vrot.slane %v302_v8, 2 }
  0x64   : > { %215 = vperm.xlu0 %1686, %v2101_v11   ;;  %224 = vperm.xlu1 %1688, %v2101_v11  }
  0x68   : > { %1687 = vset.pattern.permute.xlu0 %v1933_v2  ;;  %1689 = vset.pattern.permute.xlu1 %v1934_v12 }
  0x69   : > { %210 = vperm.xlu0 %1687, %v2101_v11   ;;  %233 = vperm.xlu1 %1689, %v2101_v11  }
  0x6d   : > { %1690 = vset.pattern.permute.xlu1 %v1931_v0 }
  0xe3   : > { %v216_v14 = vpop.permute.xlu0 %215  ;;  %v225_v15 = vpop.permute.xlu1 %224 }
  0xe4   : > { %v218_v16 = vmul.f32 %v216_v14, %v207_v13  ;;  %v227_v18 = vmul.f32 %v225_v15, %v207_v13 }
  0xe6   : > { %v220_v21 = vrot.slane %v218_v16, 1  ;;  %v229_v25 = vrot.slane %v227_v18, 2 }
  0xe8   : > { %v211_v19 = vpop.permute.xlu0 %210  ;;  %v234_v20 = vpop.permute.xlu1 %233 }
  0xe9   : > { %v213_v22 = vmul.f32 %v211_v19, %v207_v13  ;;  %v236_v24 = vmul.f32 %v234_v20, %v207_v13  ;;  %v334_v20 = vld [vmem:[#allocation2 + $0x60] ss:$0 sm:$0xff] }
  0xeb   : > { %v222_v26 = vadd.f32 %v220_v21, %v213_v22  ;;  %v238_v27 = vrot.slane %v236_v24, 3 }
  0xed   : > { %v231_v28 = vadd.f32 %v229_v25, %v222_v26 }
  0xef   : > { %v240_v30 = vadd.f32 %v238_v27, %v231_v28  ;;  %v1936_v27 = vmov 1983009808  }
  0xf0   : > { %v350_v28 = vunpack.c.l.s4 %v1936_v27 }
  0xf1   : > { %v244_v31 = vrot.slane %v240_v30, %v2113_v29 }
  0xf3   : > { %v2117_v32 = vsub.f32 %v2097_v3, %v244_v31 }
  0xf5   : > { %v246_v33 = vmul.f32 %v2117_v32, %v2117_v32 }
  0xf7   : > { %v247_v34 = vsel %vm197_vm0, %v246_v33, 0.0  ;;  %v351_v33 = vunpack.c.0.s8 %v350_v28 }
  0xf8   : > { %v248_v35 = vrot.slane %v247_v34, 4 }
  0xfa   : > { %v249_v36 = vadd.f32 %v248_v35, %v247_v34 }
  0xfc   : > { %v250_v37 = vrot.slane %v249_v36, 2 }
  0xfe   : > { %v251_v38 = vadd.f32 %v250_v37, %v249_v36 }
 0x100   : > { %v252_v39 = vrot.slane %v251_v38, 1 }
 0x102   : > { %v253_v40 = vadd.f32 %v252_v39, %v251_v38  ;;  %v354_v38 = vsub.s32 %v351_v33, %v2110_v23 }
 0x104   : > { %v254_v41 = vmul.f32 0.125, %v253_v40 }
 0x106   : > { %v255_v42 = vadd.f32 1e-08, %v254_v41  ;;  %v1699_v41 = vld [vmem:[#allocation5 + $0x20] ss:$8 sps:$4 sm:$0xff]  }
 0x107   : > { %1586 = vmatpush3.bf16.msra.mxu1 %v1699_v41 }
 0x108   : > { %1785 = vrsqrt.f32 %v255_v42  ;;  %vm258_vm1 = vcmp.eq.f32.partialorder %v255_v42, inf  ;;  %v261_v45 = vand.u32 2147483648, %v255_v42  ;;  %vm260_vm2 = vcmp.eq.f32.partialorder %v255_v42, 0.0  ;;  %1587 = vmatprep.subr.bf16.mxu1 %v1935_v6 }
 0x112   : > { %v1786_v43 = vpop.eup %1785 }
 0x113   : > { %v257_v44 = vmul.f32 %v1786_v43, %v255_v42 }
 0x115   : > { %v259_v46 = vsel %vm258_vm1, %v255_v42, %v257_v44 }
 0x116   : > { %v262_v47 = vsel %vm260_vm2, %v261_v45, %v259_v46  ;;  %v1700_v46 = vld [vmem:[#allocation5 + $0x30] ss:$8 sps:$4 sm:$0xff]  }
 0x117   : > { %266 = vperm.xlu0 %1687, %v262_v47   ;;  %271 = vperm.xlu1 %1690, %v262_v47  }
 0x118   : > { %1588 = vmatpush3.bf16.msra.mxu1 %v1700_v46 }
 0x11b   : > { %1692 = vset.pattern.permute.xlu0 %v1934_v12  ;;  %1691 = vset.pattern.permute.xlu1 %v1932_v1 }
 0x11c   : > { %289 = vperm.xlu0 %1692, %v262_v47   ;;  %280 = vperm.xlu1 %1691, %v262_v47  }
 0x120   : > { %1695 = vset.pattern.permute.xlu0 %v1932_v1  ;;  %1693 = vset.pattern.permute.xlu1 %v1933_v2  ;;  %v300_v1 = vsub.f32 %v2101_v11, %v240_v30  ;;  %v1937_v30 = vmov 1934713408  }
 0x121   : > { %v365_v31 = vunpack.c.l.s4 %v1937_v30 }
 0x123   : > { %v366_v35 = vunpack.c.0.s8 %v365_v31 }
 0x125   : > { %v369_v39 = vsub.s32 %v366_v35, %v2110_v23 }
 0x196   : > { %v267_v49 = vpop.permute.xlu0 %266  ;;  %v272_v50 = vpop.permute.xlu1 %271 }
 0x197   : > { %v274_v51 = vmul.f32 %v272_v50, %v263_v48  ;;  %v269_v55 = vmul.f32 %v267_v49, %v263_v48 }
 0x199   : > { %v276_v52 = vrot.slane %v274_v51, 1 }
 0x19b   : > { %v290_v53 = vpop.permute.xlu0 %289  ;;  %v281_v54 = vpop.permute.xlu1 %280  ;;  %v278_v58 = vadd.f32 %v276_v52, %v269_v55  ;;  %v355_v52 = vrot.slane %v2097_v3, %v354_v38 }
 0x19c   : > { %v292_v56 = vmul.f32 %v290_v53, %v263_v48  ;;  %v283_v57 = vmul.f32 %v281_v54, %v263_v48 }
 0x19d   : > { %v2150_v53 = vrot.slane %v355_v52, %v369_v39 }
 0x19e   : > { %v285_v59 = vrot.slane %v283_v57, 2  ;;  %v294_v60 = vrot.slane %v292_v56, 3  ;;  %v363_v56 = vcombine.high %v355_v52, %v1935_v6  ;;  %v348_v57 = vcombine.high %v2097_v3, %v1935_v6  ;;  %v1717_v52 = vld [vmem:[#allocation5 + $0x174] ss:$8 sps:$4 sm:$0xff]  }
 0x1a0   : > { %v287_v61 = vadd.f32 %v285_v59, %v278_v58  ;;  %v393_v58 = vcombine.high %v2150_v53, %v1935_v6  ;;  %v1701_v59 = vld [vmem:[#allocation5 + $0x4] ss:$8 sps:$4 sm:$0xff]  }
 0x1a1   : > { %564 = vmatprep.subr.bf16.mxu0 %v1701_v59 }
 0x1a2   : > { %v296_v62 = vadd.f32 %v294_v60, %v287_v61  ;;  %v377_v61 = vrot.slane %v363_v56, %v369_v39  ;;  %v1748_v56 = vld [vmem:[#allocation5 + $0x80] ss:$8 sps:$4 sm:$0xff]  }
 0x1a4   : > { %vm297_vm3 = vcmp.le.f32.partialorder %v296_v62, 1e-08 }
 0x1a5   : > { %v298_v63 = vsel %vm297_vm3, 1.0, %v296_v62  ;;  %v362_v62 = vrot.slane %v348_v57, %v354_v38 }
 0x1a6   : > { %1787 = vrcp.f32 %v298_v63  ;;  %v394_v63 = vcombine.high %v377_v61, %v1935_v6 }
 0x1a7   : > { %v385_v3 = vrot.slane %v362_v62, %v369_v39 }
 0x1b0   : > { %v1788_v4 = vpop.eup %1787 }
 0x1b1   : > { %v301_v5 = vmul.f32 %v1788_v4, %v300_v1  ;;  %v395_v1 = vcombine.high %v385_v3, %v1935_v6 }
 0x1b3   : > { %319 = vperm.xlu0 %1695, %v301_v5   ;;  %305 = vperm.xlu1 %1693, %v301_v5  }
 0x1b7   : > { %1694 = vset.pattern.permute.xlu1 %v1931_v0  ;;  %1698 = vset.pattern.permute.xlu0 %v1933_v2  ;;  %v330_v0 = vrot.slane %v302_v8, 3 }
 0x1b8   : > { %310 = vperm.xlu1 %1694, %v301_v5  }
 0x1bc   : > { %1696 = vset.pattern.permute.xlu1 %v1934_v12 }
 0x1bd   : > { %327 = vperm.xlu1 %1696, %v301_v5  }
 0x1c1   : > { %1697 = vset.pattern.permute.xlu1 %v1933_v2 }
 0x232   : > { %v306_v7 = vpop.permute.xlu1 %305  ;;  %v320_v11 = vpop.permute.xlu0 %319 }
 0x233   : > { %v308_v14 = vmul.f32 %v306_v7, %v302_v8  ;;  %v324_v16 = vmul.f32 %v322_v10, %v320_v11  ;;  %v609_v7 = vld [vmem:[#allocation2 + $0x30] ss:$0 sm:$0xff]  ;;  %v1703_v8 = vld [vmem:[#allocation5] ss:$8 sps:$4 sm:$0xff]  }
 0x234   : > { %565 = vmatpush1.bf16.msra.mxu0 %v1703_v8  ;;  %v1706_v11 = vld [vmem:[#allocation5 + $0x10] ss:$8 sps:$4 sm:$0xff]   ;;  %v1726_v8 = vld [vmem:[#allocation5 + $0x1a4] ss:$8 sps:$4 sm:$0xff]  }
 0x237   : > { %v311_v13 = vpop.permute.xlu1 %310 }
 0x238   : > { %v316_v15 = vmul.f32 %v314_v9, %v311_v13  ;;  %v1704_v9 = vld [vmem:[#allocation5 + $0x14] ss:$8 sps:$4 sm:$0xff]   ;;  %v1709_v13 = vld [vmem:[#allocation5 + $0x44] ss:$8 sps:$4 sm:$0xff]  }
 0x239   : > { %566 = vmatprep.subr.bf16.mxu0 %v1704_v9  ;;  %v1724_v9 = vld [vmem:[#allocation5 + $0x1a0] ss:$8 sps:$4 sm:$0xff]  }
 0x23a   : > { %v317_v17 = vadd.f32 %v316_v15, %v308_v14  ;;  %567 = vmatpush1.bf16.msra.mxu0 %v1706_v11  ;;  %v672_v14 = vld [vmem:[#allocation5 + $0x60] sm:$0xff]  ;;  %v1727_v11 = vld [vmem:[#allocation5 + $0x1b0] ss:$8 sps:$4 sm:$0xff]  }
 0x23b   : > { %697 = vmatprep.subr.bf16.mxu0 %v1709_v13  ;;  %v1492_v15 = vcombine.high %v672_v14, %v672_v14  ;;  %v1732_v13 = vld [vmem:[#allocation5 + $0x1c4] ss:$8 sps:$4 sm:$0xff]  }
 0x23c   : > { %v325_v18 = vadd.f32 %v324_v16, %v317_v17  ;;  %v328_v19 = vpop.permute.xlu1 %327 }
 0x23d   : > { %v332_v12 = vmul.f32 %v330_v0, %v328_v19  ;;  %1493 = vmatprep.subr.msk.bf16.mxu1 %vm746_vm5, %v1492_v15  ;;  %v1735_v15 = vld [vmem:[#allocation5 + $0x1d4] ss:$8 sps:$4 sm:$0xff]  }
 0x23f   : > { %v333_v21 = vadd.f32 %v332_v12, %v325_v18 }
 0x241   : > { %v335_v22 = vadd.f32 %v334_v20, %v333_v21 }
 0x243   : > { %v1477_v24 = vmul.f32 -1.442695, %v335_v22 }
 0x245   : > { %1789 = vpow2.f32 %v1477_v24 }
 0x24f   : > { %v1790_v25 = vpop.eup %1789 }
 0x250   : > { %v339_v26 = vadd.f32 1.0, %v1790_v25 }
 0x252   : > { %1791 = vrcp.f32 %v339_v26  ;;  %v1491_v26 = vcombine.low %v672_v14, %v672_v14  ;;  %v1730_v14 = vld [vmem:[#allocation5 + $0x1c0] ss:$8 sps:$4 sm:$0xff]  }
 0x254   : > { %v748_v33 = vsel %vm746_vm5, %v1491_v26, 0 }
 0x25c   : > { %v1792_v34 = vpop.eup %1791 }
 0x25d   : > { %v342_v36 = vmul.f32 %v1792_v34, %v1788_v4  ;;  %v378_v4 = vcombine.high %v362_v62, %v1935_v6 }
 0x25f   : > { %v346_v37 = vrot.slane %v342_v36, %v2113_v29  ;;  %v392_v5 = vrot.slane %v378_v4, %v369_v39  ;;  %v1718_v4 = vld [vmem:[#allocation5 + $0x180] ss:$8 sps:$4 sm:$0xff]  }
 0x261   : > { %v347_v40 = vmul.f32 %v346_v37, %v2117_v32  ;;  %v396_v10 = vcombine.high %v392_v5, %v1935_v6 }
 0x263   : > { %v446_v42 = vrot.slane %v347_v40, %v354_v38  ;;  %v439_v43 = vcombine.high %v347_v40, %v1935_v6 }
 0x265   : > { %v2137_v44 = vrot.slane %v446_v42, %v369_v39  ;;  %v454_v45 = vcombine.high %v446_v42, %v1935_v6  ;;  %v453_v49 = vrot.slane %v439_v43, %v354_v38 }
 0x267   : > { %v484_v47 = vcombine.high %v2137_v44, %v1935_v6  ;;  %v468_v48 = vrot.slane %v454_v45, %v369_v39  ;;  %v476_v50 = vrot.slane %v453_v49, %v369_v39  ;;  %v469_v51 = vcombine.high %v453_v49, %v1935_v6  ;;  %v1707_v49 = vld [vmem:[#allocation5 + $0x40] ss:$8 sps:$4 sm:$0xff]  }
 0x269   : > { %489 = vrot.lane.b32.xlu1 %v484_v47, %s1938_s20  ;;  %493 = vrot.lane.b32.xlu0 %v468_v48, %s1939_s25  ;;  %v485_v32 = vcombine.high %v468_v48, %v1935_v6  ;;  %v486_v54 = vcombine.high %v476_v50, %v1935_v6  ;;  %v483_v55 = vrot.slane %v469_v51, %v369_v39  ;;  %v1710_v51 = vld [vmem:[#allocation5 + $0x50] ss:$8 sps:$4 sm:$0xff]  }
 0x26b   : > { %v487_v60 = vcombine.high %v483_v55, %v1935_v6 }
 0x26d   : > { %497 = vrot.lane.b32.xlu1 %v485_v32, %s1941_s28  ;;  %501 = vrot.lane.b32.xlu0 %v476_v50, %s1942_s30  ;;  %v1712_v50 = vld [vmem:[#allocation5 + $0x54] ss:$8 sps:$4 sm:$0xff]  }
 0x271   : > { %505 = vrot.lane.b32.xlu1 %v486_v54, %s1943_s4  ;;  %509 = vrot.lane.b32.xlu0 %v483_v55, %s1944_s5  ;;  %v1743_v54 = vld [vmem:[#allocation5 + $0x70] ss:$8 sps:$4 sm:$0xff]   ;;  %v1744_v55 = vld [vmem:[#allocation5 + $0x100] ss:$8 sps:$4 sm:$0xff]  }
 0x275   : > { %513 = vrot.lane.b32.xlu1 %v487_v60, %s1945_s6  ;;  %398 = vrot.lane.b32.xlu0 %v393_v58, %s1938_s20  ;;  %s1857_s20 = sshll.u32 %s1948_s19, 4  ;;  %s1858_s20 = int_to_ptr.vmem [resolvable:$false] %s1857_s20 }
 0x276   : > { %p1860_p4 = scmp.lt.s32.totalorder %s2227_s11, %s1858_s20 }
 0x279   : > { %402 = vrot.lane.b32.xlu1 %v377_v61, %s1939_s25  ;;  %406 = vrot.lane.b32.xlu0 %v394_v63, %s1941_s28  ;;  %v1715_v63 = vld [vmem:[#allocation5 + $0x170] ss:$8 sps:$4 sm:$0xff]   ;;  %s1859_s25 = scalar_lea.vmem %s1858_s20, 32 }
 0x27a   : > { %p1861_p7 = scmp.lt.s32.totalorder %s1859_s25, %s1853_s16 }
 0x27c   : > { %p1862_p8 = por %p1861_p7, %p1860_p4 }
 0x27d   : > { %410 = vrot.lane.b32.xlu1 %v385_v3, %s1942_s30  ;;  %414 = vrot.lane.b32.xlu0 %v395_v1, %s1943_s4  ;;  %v1720_v1 = vld [vmem:[#allocation5 + $0x184] ss:$8 sps:$4 sm:$0xff]  }
 0x27e   : > { %p1863_p11 = pnand %p1862_p8, %p1856_p3 }
 0x281   : > { %612 = vperm.xlu1 %1697, %v609_v7   ;;  %418 = vrot.lane.b32.xlu0 %v392_v5, %s1944_s5  ;;  %v1723_v5 = vld [vmem:[#allocation5 + $0x194] ss:$8 sps:$4 sm:$0xff]   ;;  %v1721_v7 = vld [vmem:[#allocation5 + $0x190] ss:$8 sps:$4 sm:$0xff]  }
 0x285   : > { %422 = vrot.lane.b32.xlu1 %v396_v10, %s1945_s6  ;;  %v1729_v10 = vld [vmem:[#allocation5 + $0x1b4] ss:$8 sps:$4 sm:$0xff]  }
 0x2db   : > { %v490_v0 = vpop.permute.xlu1 %489  ;;  %v494_v16 = vpop.permute.xlu0 %493 }
 0x2dc   : > { %v516_v17 = vsel %vm197_vm0, %v2137_v44, %v490_v0  ;;  %v1733_v0 = vld [vmem:[#allocation5 + $0x1d0] ss:$8 sps:$4 sm:$0xff]  }
 0x2dd   : > { %v517_v18 = vsel %vm426_vm6, %v516_v17, %v494_v16  ;;  %v1738_v17 = vld [vmem:[#allocation5 + $0x1e4] ss:$8 sps:$4 sm:$0xff]  }
 0x2df   : > { %v498_v19 = vpop.permute.xlu1 %497  ;;  %v502_v12 = vpop.permute.xlu0 %501 }
 0x2e0   : > { %v518_v20 = vsel %vm428_vm7, %v517_v18, %v498_v19 }
 0x2e1   : > { %v519_v21 = vsel %vm430_vm8, %v518_v20, %v502_v12  ;;  %v1736_v20 = vld [vmem:[#allocation5 + $0x1e0] ss:$8 sps:$4 sm:$0xff]  }
 0x2e3   : > { %v506_v22 = vpop.permute.xlu1 %505  ;;  %v510_v25 = vpop.permute.xlu0 %509 }
 0x2e4   : > { %v520_v24 = vsel %vm432_vm9, %v519_v21, %v506_v22  ;;  %v1742_v21 = vld [vmem:[#allocation5 + $0x1f4] ss:$8 sps:$4 sm:$0xff]   ;;  %v1740_v22 = vld [vmem:[#allocation5 + $0x1f0] ss:$8 sps:$4 sm:$0xff]  }
 0x2e5   : > { %v521_v27 = vsel %vm434_vm10, %v520_v24, %v510_v25  ;;  %v1747_v25 = vld [vmem:[#allocation5 + $0x204] ss:$8 sps:$4 sm:$0xff]  }
 0x2e7   : > { %v514_v28 = vpop.permute.xlu1 %513  ;;  %v399_v34 = vpop.permute.xlu0 %398 }
 0x2e8   : > { %v522_v30 = vsel %vm436_vm11, %v521_v27, %v514_v28  ;;  %v425_v35 = vsel %vm197_vm0, %v2150_v53, %v399_v34  ;;  %v1739_v53 = vld [vmem:[#allocation5 + $0xf0] ss:$8 sps:$4 sm:$0xff]  }
 0x2e9   : > { %v523_v31 = vpack.c.bf16 %v522_v30, %v522_v30  ;;  %v1745_v30 = vld [vmem:[#allocation5 + $0x200] ss:$8 sps:$4 sm:$0xff]   ;;  %v1750_v34 = vld [vmem:[#allocation5 + $0x210] ss:$8 sps:$4 sm:$0xff]  }
 0x2eb   : > { %1590 = vmatmul.mubr.msk.bf16.vlgmr.msra.gmra.mrb[0].mxu1 %vm560_vm12, %v523_v31  ;;  %v407_v36 = vpop.permute.xlu0 %406  ;;  %v403_v37 = vpop.permute.xlu1 %402 }
 0x2ec   : > { %754 = vmatpush1.bf16.msra.mxu1 %v748_v33  ;;  %785 = vmatprep.mubr.bf16.mxu1 %v1933_v2  ;;  %v427_v38 = vsel %vm426_vm6, %v425_v35, %v403_v37  ;;  %v1752_v33 = vld [vmem:[#allocation5 + $0x214] ss:$8 sps:$4 sm:$0xff]   ;;  %v1753_v35 = vld [vmem:[#allocation5 + $0x90] ss:$8 sps:$4 sm:$0xff]   ;;  %v1757_v37 = vld [vmem:[#allocation5 + $0x224] ss:$8 sps:$4 sm:$0xff]  }
 0x2ed   : > { %v429_v39 = vsel %vm428_vm7, %v427_v38, %v407_v36  ;;  %1186 = vmatprep.subr.bf16.mxu1 %v1717_v52  ;;  %v1754_v36 = vld [vmem:[#allocation5 + $0x120] ss:$8 sps:$4 sm:$0xff]   ;;  %v1777_v52 = vld [vmem:[#allocation5 + $0x264] ss:$8 sps:$4 sm:$0xff]  }
 0x2ee   : > { %v1755_v38 = vld [vmem:[#allocation5 + $0x220] ss:$8 sps:$4 sm:$0xff]  }
 0x2ef   : > { %v415_v40 = vpop.permute.xlu0 %414  ;;  %v411_v41 = vpop.permute.xlu1 %410 }
 0x2f0   : > { %v431_v42 = vsel %vm430_vm8, %v429_v39, %v411_v41  ;;  %v1758_v39 = vld [vmem:[#allocation5 + $0xa0] ss:$8 sps:$4 sm:$0xff]   ;;  %v1762_v41 = vld [vmem:[#allocation5 + $0x234] ss:$8 sps:$4 sm:$0xff]  }
 0x2f1   : > { %v433_v43 = vsel %vm432_vm9, %v431_v42, %v415_v40  ;;  %v1759_v40 = vld [vmem:[#allocation5 + $0x130] ss:$8 sps:$4 sm:$0xff]  }
 0x2f2   : > { %v1760_v42 = vld [vmem:[#allocation5 + $0x230] ss:$8 sps:$4 sm:$0xff]  }
 0x2f3   : > { %v419_v44 = vpop.permute.xlu0 %418 }
 0x2f4   : > { %v435_v46 = vsel %vm434_vm10, %v433_v43, %v419_v44  ;;  %v1763_v43 = vld [vmem:[#allocation5 + $0xb0] ss:$8 sps:$4 sm:$0xff]   ;;  %v1764_v44 = vld [vmem:[#allocation5 + $0x140] ss:$8 sps:$4 sm:$0xff]  }
 0x300   : > { %v613_v45 = vpop.permute.xlu1 %612 }
 0x304   : > { %v423_v47 = vpop.permute.xlu1 %422 }
 0x305   : > { %v437_v48 = vsel %vm436_vm11, %v435_v46, %v423_v47  ;;  %v1767_v46 = vld [vmem:[#allocation5 + $0x244] ss:$8 sps:$4 sm:$0xff]   ;;  %v1768_v47 = vld [vmem:[#allocation5 + $0xc0] ss:$8 sps:$4 sm:$0xff]  }
 0x306   : > { %v438_v32 = vpack.c.bf16 %v437_v48, %v437_v48  ;;  %v1769_v48 = vld [vmem:[#allocation5 + $0x150] ss:$8 sps:$4 sm:$0xff]  }
 0x308   : > { %1482 = vmatmul.mubr.msk.bf16.vlgmr.msra.gmra.mrb[0].mxu0 %vm560_vm12, %v438_v32  ;;  %v1770_v32 = vld [vmem:[#allocation5 + $0x250] ss:$8 sps:$4 sm:$0xff]  }
 0x309   : > { %698 = vmatpush1.bf16.msra.mxu0 %v1707_v49  ;;  %729 = vmatprep.mubr.bf16.mxu0 %v1933_v2  ;;  %v1772_v49 = vld [vmem:[#allocation5 + $0x254] ss:$8 sps:$4 sm:$0xff]  }
 0x30a   : > { %699 = vmatprep.subr.bf16.mxu0 %v1712_v50  ;;  %v1773_v50 = vld [vmem:[#allocation5 + $0xd0] ss:$8 sps:$4 sm:$0xff]  }
 0x30d   : > { %700 = vmatpush1.bf16.msra.mxu0 %v1710_v51  ;;  %v1774_v51 = vld [vmem:[#allocation5 + $0x160] ss:$8 sps:$4 sm:$0xff]  }
 0x30e   : > { %1558 = vmatprep.subr.bf16.mxu0 %v1739_v53  ;;  %v1775_v53 = vld [vmem:[#allocation5 + $0x260] ss:$8 sps:$4 sm:$0xff]  }
 0x310   : > { %1490 = vmatmul.mubr.msk.bf16.vlgmr.msra.gmra.mrb[4].mxu0 %vm560_vm12, %v523_v31  ;;  %v1749_v31 = vld [vmem:[#allocation5 + $0x110] ss:$8 sps:$4 sm:$0xff]  }
 0x311   : > { %1559 = vmatpush3.bf16.msra.mxu0 %v1743_v54  ;;  %v1778_v54 = vld [vmem:[#allocation5 + $0xe0] ss:$8 sps:$4 sm:$0xff]  }
 0x312   : > { %1560 = vmatprep.subr.bf16.mxu0 %v1744_v55  ;;  %v849_v55 = vld [vmem:[#allocation2 + $0x40] ss:$0 sm:$0xff] }
 0x313   : > { %852 = vperm.xlu0 %1698, %v849_v55  }
 0x315   : > { %1561 = vmatpush3.bf16.msra.mxu0 %v1748_v56  ;;  %v795_v56 = vld [vmem:[#allocation2 + $0x10] ss:$8 sm:$0x3] }
 0x316   : > { %1562 = vmatprep.subr.bf16.mxu0 %v1749_v31 }
 0x319   : > { %1563 = vmatpush3.bf16.msra.mxu0 %v1753_v35 }
 0x31a   : > { %1564 = vmatprep.subr.bf16.mxu0 %v1754_v36  ;;  %v1781_v36 = vld [vmem:[#allocation5 + $0x280] ss:$8 sps:$4 sm:$0xff]  }
 0x31d   : > { %1565 = vmatpush3.bf16.msra.mxu0 %v1758_v39  ;;  %v1784_v39 = vld [vmem:[#allocation5 + $0x2b0] ss:$8 sps:$4 sm:$0xff]  }
 0x31e   : > { %1566 = vmatprep.subr.bf16.mxu0 %v1759_v40  ;;  %v1281_v40 = vld [vmem:[#allocation2 + $0x20] ss:$8 sm:$0x3] }
 0x321   : > { %1567 = vmatpush3.bf16.msra.mxu0 %v1763_v43 }
 0x322   : > { %1568 = vmatprep.subr.bf16.mxu0 %v1764_v44 }
 0x325   : > { %1569 = vmatpush3.bf16.msra.mxu0 %v1768_v47 }
 0x326   : > { %1570 = vmatprep.subr.bf16.mxu0 %v1769_v48 }
 0x329   : > { %1571 = vmatpush3.bf16.msra.mxu0 %v1773_v50 }
 0x32a   : > { %1572 = vmatprep.subr.bf16.mxu0 %v1774_v51  ;;  %v1308_v51 = vld [vmem:[#allocation2 + $0x50] ss:$0 sm:$0xff] }
 0x32d   : > { %1573 = vmatpush3.bf16.msra.mxu0 %v1778_v54 }
 0x3be   : > { %v664_v57 = vpop.f32.mrb[0].mxu1 }
 0x3bf   : > { %v665_v58 = vadd.f32 %v664_v57, %v613_v45  ;;  %v1591_v59 = vpop.f32.mrb[1].mxu1  ;;  %v1765_v45 = vld [vmem:[#allocation5 + $0x240] ss:$8 sps:$4 sm:$0xff]  }
 0x3c0   : > { %v667_v60 = vpop.f32.mrb[2].mxu1  ;;  %v528_v57 = vld [vmem:[#allocation2] ss:$8 sm:$0x3]  ;;  %v800_v59 = vrot.slane %v795_v56, %v2113_v29 }
 0x3c1   : > { %v670_v61 = vmax.f32 %v665_v58, 0.0  ;;  %v1592_v62 = vpop.f32.mrb[3].mxu1  ;;  %v2198_v58 = vsub.s32 1, %v2110_v23 }
 0x3c2   : > { %v553_v62 = vrot.slane %v528_v57, %v2113_v29 }
 0x3c3   : > { %v671_v3 = vpack.c.bf16 %v670_v61, %v670_v61  ;;  %v804_v61 = vrot.slane %v795_v56, %v2198_v58 }
 0x3c5   : > { %1494 = vmatmul.mubr.msk.bf16.vlgmr.msra.gmra.mrb[4].mxu1 %vm426_vm6, %v671_v3 }
 0x3c6   : > { %1187 = vmatpush1.bf16.msra.mxu1 %v1715_v63 }
 0x3c7   : > { %1188 = vmatprep.subr.bf16.mxu1 %v1720_v1  ;;  %v557_v1 = vrot.slane %v528_v57, %v2198_v58 }
 0x3ca   : > { %1189 = vmatpush1.bf16.msra.mxu1 %v1718_v4 }
 0x3cb   : > { %1190 = vmatprep.subr.bf16.mxu1 %v1723_v5 }
 0x3ce   : > { %1191 = vmatpush1.bf16.msra.mxu1 %v1721_v7 }
 0x3cf   : > { %1192 = vmatprep.subr.bf16.mxu1 %v1726_v8 }
 0x3d2   : > { %1193 = vmatpush1.bf16.msra.mxu1 %v1724_v9 }
 0x3d3   : > { %1194 = vmatprep.subr.bf16.mxu1 %v1729_v10 }
 0x3d6   : > { %1195 = vmatpush1.bf16.msra.mxu1 %v1727_v11 }
 0x3d7   : > { %1196 = vmatprep.subr.bf16.mxu1 %v1732_v13 }
 0x3da   : > { %1197 = vmatpush1.bf16.msra.mxu1 %v1730_v14 }
 0x3db   : > { %v2189_v16 = vpop.f32.mrb[0].mxu0  ;;  %1198 = vmatprep.subr.bf16.mxu1 %v1735_v15 }
 0x3dc   : > { %v2191_v18 = vpop.f32.mrb[1].mxu0  ;;  %v599_v23 = vadd.f32 %v2189_v16, %v553_v62  ;;  %v993_v16 = vld [vmem:[#allocation5 + $0x270] sm:$0xff] }
 0x3dd   : > { %v602_v19 = vpop.f32.mrb[2].mxu0  ;;  %v601_v11 = vadd.f32 %v2191_v18, %v557_v1  ;;  %v1543_v18 = vcombine.low %v993_v16, %v993_v16 }
 0x3de   : > { %v603_v12 = vpop.f32.mrb[3].mxu0  ;;  %1199 = vmatpush1.bf16.msra.mxu1 %v1733_v0 }
 0x3df   : > { %1200 = vmatprep.subr.bf16.mxu1 %v1738_v17  ;;  %v1544_v12 = vcombine.high %v993_v16, %v993_v16 }
 0x3e1   : > { %1545 = vmatprep.subr.msk.bf16.mxu0 %vm746_vm5, %v1544_v12 }
 0x3e2   : > { %1201 = vmatpush1.bf16.msra.mxu1 %v1736_v20  ;;  %v1235_v20 = vsel %vm746_vm5, %v1543_v18, 0 }
 0x3e3   : > { %v2193_v24 = vpop.f32.mrb[4].mxu0  ;;  %1202 = vmatprep.subr.bf16.mxu1 %v1742_v21  ;;  %v853_v21 = vpop.permute.xlu0 %852 }
 0x3e4   : > { %v2195_v26 = vpop.f32.mrb[5].mxu0 }
 0x3e5   : > { %v735_v27 = vpop.f32.mrb[6].mxu0 }
 0x3e6   : > { %v736_v28 = vpop.f32.mrb[7].mxu0  ;;  %1203 = vmatpush1.bf16.msra.mxu1 %v1740_v22 }
 0x3e7   : > { %1204 = vmatprep.subr.bf16.mxu1 %v1747_v25 }
 0x3ea   : > { %1205 = vmatpush1.bf16.msra.mxu1 %v1745_v30 }
 0x3eb   : > { %1206 = vmatprep.subr.bf16.mxu1 %v1752_v33 }
 0x3ee   : > { %1207 = vmatpush1.bf16.msra.mxu1 %v1750_v34 }
 0x3ef   : > { %1208 = vmatprep.subr.bf16.mxu1 %v1757_v37  ;;  %v1782_v37 = vld [vmem:[#allocation5 + $0x290] ss:$8 sps:$4 sm:$0xff]  }
 0x3f2   : > { %1209 = vmatpush1.bf16.msra.mxu1 %v1755_v38  ;;  %v1783_v38 = vld [vmem:[#allocation5 + $0x2a0] ss:$8 sps:$4 sm:$0xff]  }
 0x3f3   : > { %1210 = vmatprep.subr.bf16.mxu1 %v1762_v41 }
 0x3f6   : > { %1211 = vmatpush1.bf16.msra.mxu1 %v1760_v42  ;;  %v1286_v42 = vrot.slane %v1281_v40, %v2198_v58 }
 0x3f7   : > { %1212 = vmatprep.subr.bf16.mxu1 %v1767_v46 }
 0x3fa   : > { %1213 = vmatpush1.bf16.msra.mxu1 %v1765_v45 }
 0x3fb   : > { %1214 = vmatprep.subr.bf16.mxu1 %v1772_v49 }
 0x3fe   : > { %1215 = vmatpush1.bf16.msra.mxu1 %v1770_v32 }
 0x3ff   : > { %1216 = vmatprep.subr.bf16.mxu1 %v1777_v52 }
 0x402   : > { %1217 = vmatpush1.bf16.msra.mxu1 %v1775_v53 }
 0x498   : > { %v787_v60 = vpop.f32.mrb[4].mxu1 }
 0x499   : > { %v788_v63 = vadd.f32 %v787_v60, %v2193_v24  ;;  %v789_v3 = vpop.f32.mrb[5].mxu1 }
 0x49a   : > { %v790_v4 = vadd.f32 %v789_v3, %v2195_v26  ;;  %v791_v5 = vpop.f32.mrb[6].mxu1 }
 0x49b   : > { %v807_v7 = vadd.f32 %v800_v59, %v788_v63  ;;  %v792_v8 = vpop.f32.mrb[7].mxu1 }
 0x49c   : > { %v808_v9 = vadd.f32 %v804_v61, %v790_v4 }
 0x49d   : > { %v809_v10 = vmax.f32 %v807_v7, 0.0 }
 0x49e   : > { %v810_v13 = vmax.f32 %v808_v9, 0.0 }
 0x49f   : > { %v811_v14 = vadd.f32 %v809_v10, %v599_v23 }
 0x4a0   : > { %v812_v15 = vadd.f32 %v810_v13, %v601_v11  ;;  %1291 = vrot.lane.b32.xlu1 %v810_v13, %s1946_s7 }
 0x4a1   : > { %1793 = vtanh.f32 %v811_v14 }
 0x4a2   : > { %1795 = vtanh.f32 %v812_v15 }
 0x4ab   : > { %v1794_v29 = vpop.eup %1793 }
 0x4ac   : > { %v1796_v0 = vpop.eup %1795  ;;  %v815_v19 = vpack.c.bf16 %v1794_v29, %v1794_v29 }
 0x4ad   : > { %v816_v17 = vpack.c.bf16 %v1796_v0, %v1796_v0 }
 0x4af   : > { %983 = vmatprep.mubr.bf16.mxu0 %v816_v17  ;;  %1218 = vmatprep.mubr.bf16.mxu1 %v816_v17 }
 0x4b0   : > { %984 = vmatmul.mubr.bf16.vlgmr.msra.gmra.mrb[8].mxu0 %v815_v19  ;;  %1219 = vmatmul.mubr.bf16.vlgmr.msra.gmra.mrb[8].mxu1 %v815_v19 }
 0x4b1   : > { %1272 = vmatprep.mubr.bf16.mxu0 %v1933_v2  ;;  %1241 = vmatpush1.bf16.msra.mxu0 %v1235_v20 }
 0x4b2   : > { %1593 = vmatprep.subr.bf16.mxu0 %v1935_v6 }
 0x512   : > { %v1292_v49 = vpop.permute.xlu1 %1291 }
 0x583   : > { %v1574_v22 = vpop.f32.mrb[8].mxu0  ;;  %v1220_v24 = vpop.f32.mrb[8].mxu1 }
 0x584   : > { %v1575_v25 = vpop.f32.mrb[9].mxu0  ;;  %v1221_v26 = vpop.f32.mrb[9].mxu1 }
 0x585   : > { %v1576_v27 = vadd.f32 %v1575_v25, %v1574_v22  ;;  %v1577_v28 = vpop.f32.mrb[10].mxu0  ;;  %v1223_v30 = vpop.f32.mrb[10].mxu1 }
 0x586   : > { %v1578_v31 = vpop.f32.mrb[11].mxu0  ;;  %v1224_v2 = vpop.f32.mrb[11].mxu1 }
 0x587   : > { %v986_v33 = vadd.f32 %v1576_v27, %v853_v21 }
 0x589   : > { %v991_v34 = vmax.f32 %v986_v33, 0.0 }
 0x58b   : > { %v992_v35 = vpack.c.bf16 %v991_v34, %v991_v34 }
 0x58d   : > { %1546 = vmatmul.mubr.msk.bf16.vlgmr.msra.gmra.mrb[12].mxu0 %vm426_vm6, %v992_v35 }
 0x58e   : > { %1601 = vmatprep.mubr.msk.bf16.mxu0 %vm1940_vm4, %v1935_v6  ;;  %1594 = vmatpush3.bf16.msra.mxu0 %v1781_v36 }
 0x58f   : > { %1595 = vmatprep.subr.bf16.mxu0 %v1935_v6 }
 0x592   : > { %1596 = vmatpush3.bf16.msra.mxu0 %v1782_v37 }
 0x593   : > { %1597 = vmatprep.subr.bf16.mxu0 %v1935_v6 }
 0x596   : > { %1598 = vmatpush3.bf16.msra.mxu0 %v1783_v38 }
 0x597   : > { %1599 = vmatprep.subr.bf16.mxu0 %v1935_v6 }
 0x59a   : > { %1600 = vmatpush3.bf16.msra.mxu0 %v1784_v39 }
 0x660   : > { %v1274_v41 = vpop.f32.mrb[12].mxu0 }
 0x661   : > { %v1275_v43 = vpop.f32.mrb[13].mxu0 }
 0x662   : > { %v1276_v44 = vadd.f32 %v1275_v43, %v1221_v26  ;;  %v1277_v45 = vpop.f32.mrb[14].mxu0 }
 0x663   : > { %v1278_v46 = vpop.f32.mrb[15].mxu0 }
 0x664   : > { %v1288_v47 = vadd.f32 %v1286_v42, %v1276_v44 }
 0x666   : > { %v1289_v48 = vmax.f32 %v1288_v47, 0.0 }
 0x668   : > { %1295 = vrot.lane.b32.xlu1 %v1289_v48, %s1947_s26 }
 0x6da   : > { %v1296_v32 = vpop.permute.xlu1 %1295 }
 0x6db   : > { %v1298_v6 = vsel %vm560_vm12, %v1292_v49, %v1296_v32 }
 0x6dc   : > { %v1299_v50 = vpack.c.bf16 %v1298_v6, %v1298_v6 }
 0x6de   : > { %1602 = vmatmul.mubr.msk.bf16.vlgmr.msra.gmra.mrb[16].mxu0 %vm1333_vm13, %v1299_v50 }
 0x7b1   : > { %v1371_v52 = vpop.f32.mrb[16].mxu0 }
 0x7b2   : > { %v1372_v53 = vadd.f32 %v1371_v52, %v1308_v51  ;;  %v1603_v54 = vpop.f32.mrb[17].mxu0 }
 0x7b3   : > { %v1374_v55 = vpop.f32.mrb[18].mxu0 }
 0x7b4   : > { %1377 = vst [vmem:[%s190_s10] sm:$0x1] %v1372_v53  ;;  %v1604_v56 = vpop.f32.mrb[19].mxu0 }
 0x7b5   : > { %1866 = shalt.err (!%p1863_p11)
}
 0x7b6   : > { %s1867_s28 = scalar_lea.hbm %s2225_s29, 16  ;;  %s1871_s5 = scalar_lea.hbm %s2270_s3, 32 }
 0x7b7   : > { %p1868_p13 = scmp.ne.s32.totalorder %s2225_s29, %s1867_s28  ;;  %p1872_p6 = scmp.lt.u32.totalorder %s2225_s29, %s2270_s3 }
 0x7b8   : > { %p1873_p9 = scmp.lt.u32.totalorder %s1871_s5, %s1867_s28  ;;  %p1875_p12 = scmp.lt.u32.totalorder %s1867_s28, %s2225_s29 }
 0x7b9   : > { %p1869_p0 = pnand %p1868_p13, %p2283_p1 }
 0x7ba   : > { %p1874_p10 = por %p1873_p9, %p1872_p6 }
 0x7bb   : > { %p1870_p5 = pneg %p1869_p0 }
 0x7bc   : > { %p1876_p2 = por %p1875_p12, %p1874_p10 }
 0x7be   : > { %p1877_p3 = pnand %p1876_p2, %p1870_p5 }
 0x7c0   : > { %1880 = shalt.err (!%p1877_p3)
}
 0x7c1   : > { %1613 = dma.vmem_to_hbm [thread:$0]  (%p2283_p1), %s2227_s11, 16, %s2225_s29, %s1379_s17  }
 0x7c2 PF: > { %p1630_p4 = scmp.ge.s32.totalorder %s1923_s15, 2  ;;  %s1403_s26 = sand.u32 1, %s1911_s12  }
 0x7c3   : > { %p2284_p7 = scmp.ne.s32.totalorder %s2275_s23, 0  ;;  %s1404_s8 = scalar_lea.sflag [#allocation4], %s1403_s26 }
 0x7c5   : > { %p1623_p8 = pnand %p1630_p4, %p2284_p7 }
 0x7c7   : > { %1906 = dma.done.wait (!%p1623_p8), %s1404_s8, 16  }
 0x7c8   : > { %1908 = vsyncadd (!%p1623_p8), %s1404_s8, 4294967280  ;;  %p15_p11 = scmp.ge.s32.totalorder %s1994_s18, 4   ;;  %s2285_s12 = smov %s1915_s13 }
 0x7c9   : > { %s2286_s13 = smov %s1919_s14  ;;  %s2287_s14 = smov %s2005_s21 }
 0x7ca   : > { %s2288_s15 = smov %s1994_s18  ;;  %17 = sbr.rel (!%p15_p11) target bundleno = 5 (0x5), region = 78 }
 0x7d1   :  { %1408 = vsyncpa [#allocation3], 1 }
 0x7d2   :  { %1410 = vsyncpa [#allocation3 + $0x1], 1 }
 0x7d3   :  { %1411 = vsyncpa [#allocation6], 1 }
 0x7d4   :  { %1412 = vsyncpa [#allocation4], 1 }
 0x7d5   :  { %1414 = vsyncpa [#allocation4 + $0x1], 1 }

// kernel: tpu_custom_call.1
= control target key start
LH: loop header
LB: loop body
LE: loop exit
PB: predicated region body
PF: predicated region fallthrough
CT: control target
= control target key end

     0   :  { %8 = vsyncpa [#allocation3], 0  ;;  %s2267_s0 = inlined_call_operand.vmem [shape: f32[2,8,4], index: 0, kind: input, shape index: {}]   ;;  %s2268_s1 = inlined_call_operand.hbm [shape: f32[80,256], index: 1, kind: input, shape index: {}]   ;;  %s2269_s2 = inlined_call_operand.hbm [shape: bf16[704,256], index: 2, kind: input, shape index: {}]   ;;  %s2270_s3 = inlined_call_operand.hbm [shape: f32[2,1,128], index: 3, kind: output, shape index: {}]  }
   0x1   :  { %9 = vsyncpa [#allocation6], 0 }
   0x2   :  { %10 = vsyncpa [#allocation4], 0 }
   0x3   :  { %12 = vsyncpa [#allocation4 + $0x1], 0  ;;  %s1969_s12 = smov 0   ;;  %s1971_s13 = smov 0  }
   0x4   :  { %s1973_s14 = smov 0   ;;  %s1975_s15 = smov 0  }
   0x5 LB: > { %s1990_s16 = sadd.s32 4294967295, %s1923_s15   ;;  %s1468_s17 = sadd.s32 4294967294, %s1923_s15   ;;  %s1923_s15 = sphi %s1975_s15, %s2288_s15   ;;  %s1919_s14 = sphi %s1973_s14, %s2287_s14   ;;  %s1915_s13 = sphi %s1971_s13, %s2286_s13   ;;  %s1911_s12 = sphi %s1969_s12, %s2285_s12  }
   0x6   : > { %s1994_s18 = sadd.s32 1, %s1923_s15   ;;  %s93_s19 = sadd.s32 1, %s1919_s14 }
   0x7   : > { %s90_s20 = ssub.s32 %s1923_s15, %s1994_s18  ;;  %p103_p0 = scmp.ne.s32.totalorder %s1919_s14, %s1915_s13 }
   0x8   : > { %p91_p1 = scmp.eq.s32.totalorder %s90_s20, 0  ;;  %p104_p2 = scmp.eq.s32.totalorder %s1990_s16, 1 }
   0x9   : > { %p109_p3 = scmp.ne.s32.totalorder %s1915_s13, %s1911_s12  ;;  %p110_p4 = scmp.eq.s32.totalorder %s1468_s17, 1 }
   0xa   : > { %s2005_s21 = scalar_select %p91_p1, %s1919_s14, %s93_s19  }
   0xb   : > { %p2007_p5 = por %p104_p2, %p103_p0  ;;  %p2011_p6 = por %p110_p4, %p109_p3 }
   0xc   : > { %p1469_p7 = scmp.ge.s32.totalorder %s1923_s15, 1  ;;  %p117_p8 = scmp.lt.s32.totalorder %s1923_s15, 3 }
   0xd   : > { %s2274_s22 = scalar_select %p2007_p5, 1, 0 }
   0xe   : > { %s2275_s23 = scalar_select %p2011_p6, 1, 0 }
   0xf   : > { %p2271_p9 = scmp.eq.s32.totalorder %s1990_s16, 0  ;;  %p2018_p10 = pnand %p1469_p7, %p117_p8 }
  0x10   : > { %s1925_s25 = smov [#allocation2]   ;;  %s1926_s28 = smov [#allocation5]  }
  0x11   : > { %s2276_s24 = scalar_select %p2018_p10, 1, 0 }
  0x12   : > { %s129_s26 = sshll.u32 %s1925_s25, 4  ;;  %p1615_p11 = pneg %p2018_p10  ;;  %s130_s26 = int_to_ptr.vmem [resolvable:$true] %s129_s26 }
  0x13   : > { %s142_s29 = sshll.u32 %s1926_s28, 4  ;;  %s1797_s5 = scalar_lea.hbm %s2268_s1, 2560  ;;  %s2030_s29 = int_to_ptr.vmem [resolvable:$true] %s142_s29 }
  0x14   : > { %p2026_p12 = pnand %p2271_p9, %p1615_p11  ;;  %p1798_p13 = scmp.ne.s32.totalorder %s2268_s1, %s1797_s5 }
  0x15   : > { %p1804_p3 = scmp.lt.u32.totalorder %s1797_s5, %s2268_s1 }
  0x16   : > { %p1799_p0 = pneg %p2026_p12 }
  0x18   : > { %p1800_p1 = pnand %p1799_p0, %p1798_p13 }
  0x1a   : > { %p1801_p2 = pneg %p1800_p1 }
  0x1c   : > { %p1806_p4 = pnand %p1804_p3, %p1801_p2 }
  0x1e   : > { %1809 = shalt.err (!%p1806_p4)
}
  0x1f   : > { %s1810_s10 = scalar_lea.vmem %s130_s26, 2560  ;;  %p1818_p9 = scmp.lt.s32.totalorder %s130_s26, %s130_s26 }
  0x20   : > { %p1811_p7 = scmp.ne.s32.totalorder %s130_s26, %s1810_s10  ;;  %p1819_p6 = scmp.lt.s32.totalorder %s1810_s10, %s1810_s10 }
  0x22   : > { %p1813_p8 = pnand %p1811_p7, %p1799_p0  ;;  %p1820_p5 = por %p1819_p6, %p1818_p9 }
  0x24   : > { %p1814_p11 = pneg %p1813_p8 }
  0x26   : > { %p1821_p10 = pnand %p1820_p5, %p1814_p11 }
  0x28   : > { %1824 = shalt.err (!%p1821_p10)
}
  0x29   : > { %s1927_s11 = smov 256   ;;  %s1928_s17 = smov 16  }
  0x2a   : > { %1618 = dma.hbm_to_vmem [thread:$0]  (!%p2026_p12), %s2268_s1, 2560, %s130_s26, [#allocation3], %s1927_s11, %s1927_s11, %s1928_s17  }
  0x2b   : > { %s1825_s30 = scalar_lea.hbm %s2269_s2, 11264 }
  0x2c   : > { %p1826_p13 = scmp.ne.s32.totalorder %s2269_s2, %s1825_s30  ;;  %p1832_p9 = scmp.lt.u32.totalorder %s1825_s30, %s2269_s2 }
  0x2e   : > { %p1828_p5 = pnand %p1826_p13, %p1799_p0 }
  0x30   : > { %p1829_p6 = pneg %p1828_p5 }
  0x32   : > { %p1834_p10 = pnand %p1832_p9, %p1829_p6 }
  0x34   : > { %1837 = shalt.err (!%p1834_p10)
}
  0x35   : > { %s1838_s26 = scalar_lea.vmem %s2030_s29, 11264  ;;  %p1846_p4 = scmp.lt.s32.totalorder %s2030_s29, %s2030_s29 }
  0x36   : > { %p1839_p1 = scmp.ne.s32.totalorder %s2030_s29, %s1838_s26  ;;  %p1847_p7 = scmp.lt.s32.totalorder %s1838_s26, %s1838_s26 }
  0x38   : > { %p1841_p2 = pnand %p1839_p1, %p1799_p0  ;;  %p1848_p8 = por %p1847_p7, %p1846_p4 }
  0x3a   : > { %p1842_p3 = pneg %p1841_p2 }
  0x3c   : > { %p1849_p11 = pnand %p1848_p8, %p1842_p3 }
  0x3e   : > { %1852 = shalt.err (!%p1849_p11)
}
  0x3f   : > { %s1929_s8 = smov 128   ;;  %s1930_s9 = smov 8  }
  0x40   : > { %1621 = dma.hbm_to_vmem [thread:$0]  (!%p2026_p12), %s2269_s2, 11264, %s2030_s29, [#allocation6], %s1929_s8, %s1929_s8, %s1930_s9  }
  0x41   : > { %p2278_p13 = scmp.ne.s32.totalorder %s2276_s24, 0 }
  0x42   : > { %p2279_p0 = scmp.eq.s32.totalorder (!%p2278_p13), %s1990_s16, 0 }
  0x43   : > { %165 = sbr.rel (%p2278_p13) target bundleno = 1986 (0x7c2), region = 32 }
  0x4a   : > { %1898 = dma.done.wait (%p2279_p0), [#allocation3], 2560   ;;  %p2280_p5 = pmov %p2279_p0 }
  0x4b   : > { %p2281_p6 = pmov %p2279_p0 }
  0x4c   : > { %1900 = vsyncadd (%p2280_p5), [#allocation3], 4294964736 }
  0x4d   : > { %1902 = dma.done.wait (%p2281_p6), [#allocation6], 11264   ;;  %p2282_p9 = pmov %p2279_p0 }
  0x4e   : > { %p191_p10 = scmp.lt.s32.totalorder %s1990_s16, 1  ;;  %v1931_v0 = vmov 1   ;;  %v1932_v1 = vmov 2   ;;  %v1933_v2 = vmov 0   ;;  %vm197_vm0 = vcmask 31744   ;;  %s1938_s20 = smov 4  }
  0x4f   : > { %1904 = vsyncadd (%p2282_p9), [#allocation6], 4294956032  ;;  %1686 = vset.pattern.permute.xlu0 %v1931_v0  ;;  %1688 = vset.pattern.permute.xlu1 %v1932_v1  ;;  %v1934_v12 = vmov 3   ;;  %v207_v13 = vld [vmem:[#allocation2 + $0x70] sm:$0xf]  ;;  %v241_v17 = vlaneseq  ;;  %s1939_s25 = smov 8  }
  0x50   : > { %s192_s24 = scalar_select %p191_p10, %s1990_s16, 1  ;;  %596 = vmatprep.mubr.bf16.mxu0 %v1933_v2  ;;  %v263_v48 = vld [vmem:[#allocation2 + $0x80] sm:$0xf]  ;;  %vm1940_vm4 = vmmov 0   ;;  %vm746_vm5 = vcmask 1043456   ;;  %vm426_vm6 = vcmask 64512  }
  0x51   : > { %v2110_v23 = vshrl.u32 %v241_v17, 7  ;;  %s1941_s28 = smov 12   ;;  %s1942_s30 = smov 16   ;;  %vm428_vm7 = vcmask 97280   ;;  %vm430_vm8 = vcmask 130048   ;;  %vm432_vm9 = vcmask 162816  }
  0x52   : > { %s1476_s27 = sshll.u32 %s192_s24, 3  ;;  %s1943_s4 = smov 20   ;;  %vm434_vm10 = vcmask 195584   ;;  %vm436_vm11 = vcmask 228352   ;;  %vm560_vm12 = vcmask 261120   ;;  %vm1333_vm13 = vcmask 523264  }
  0x53   : > { %s194_s19 = scalar_lea.vmem %s2267_s0, %s1476_s27  ;;  %v2113_v29 = vsub.s32 0, %v2110_v23  ;;  %s1944_s5 = smov 24  }
  0x54   : > { %v2097_v3 = vld [vmem:[%s194_s19] sm:$0xff]  ;;  %s1945_s6 = smov 28   ;;  %s1946_s7 = smov 32  }
  0x55   : > { %v198_v4 = vsel %vm197_vm0, %v2097_v3, 0.0  ;;  %s1947_s26 = smov 64   ;;  %s189_s8 = sand.u32 1, %s1915_s13  }
  0x56   : > { %v199_v5 = vrot.slane %v198_v4, 4  ;;  %s1552_s9 = sshll.u32 %s1990_s16, 4  ;;  %s190_s10 = scalar_lea.vmem [#allocation7], %s189_s8 }
  0x57   : > { %s1391_s11 = sshll.u32 %s190_s10, 4  ;;  %s2225_s29 = scalar_lea.hbm %s2270_s3, %s1552_s9  ;;  %s2227_s11 = int_to_ptr.vmem [resolvable:$true] %s1391_s11 }
  0x58   : > { %v200_v6 = vadd.f32 %v199_v5, %v198_v4  ;;  %s1379_s17 = scalar_lea.sflag [#allocation4], %s189_s8  ;;  %s1853_s16 = scalar_lea.vmem %s2227_s11, 16 }
  0x59   : > { %p1854_p12 = scmp.ne.s32.totalorder %s2227_s11, %s1853_s16  ;;  %p2283_p1 = scmp.ne.s32.totalorder %s2274_s22, 0 }
  0x5a   : > { %v201_v7 = vrot.slane %v200_v6, 2  ;;  %s1948_s19 = smov [#allocation7]  }
  0x5b   : > { %p1855_p2 = pnand %p1854_p12, %p2283_p1 }
  0x5c   : > { %v202_v8 = vadd.f32 %v201_v7, %v200_v6  ;;  %v1935_v6 = vmov 0.0  }
  0x5d   : > { %1585 = vmatprep.subr.bf16.mxu1 %v1935_v6  ;;  %1589 = vmatprep.mubr.msk.bf16.mxu1 %vm1940_vm4, %v1935_v6  ;;  %p1856_p3 = pneg %p1855_p2 }
  0x5e   : > { %v203_v9 = vrot.slane %v202_v8, 1 }
  0x60   : > { %v204_v10 = vadd.f32 %v203_v9, %v202_v8  ;;  %v302_v8 = vld [vmem:[#allocation2 + $0x90] sm:$0xf] }
  0x61   : > { %v314_v9 = vrot.slane %v302_v8, 1 }
  0x62   : > { %v2101_v11 = vmul.f32 0.125, %v204_v10  ;;  %v322_v10 = vrot.slane %v302_v8, 2 }
  0x64   : > { %215 = vperm.xlu0 %1686, %v2101_v11   ;;  %224 = vperm.xlu1 %1688, %v2101_v11  }
  0x68   : > { %1687 = vset.pattern.permute.xlu0 %v1933_v2  ;;  %1689 = vset.pattern.permute.xlu1 %v1934_v12 }
  0x69   : > { %210 = vperm.xlu0 %1687, %v2101_v11   ;;  %233 = vperm.xlu1 %1689, %v2101_v11  }
  0x6d   : > { %1690 = vset.pattern.permute.xlu1 %v1931_v0 }
  0xe3   : > { %v216_v14 = vpop.permute.xlu0 %215  ;;  %v225_v15 = vpop.permute.xlu1 %224 }
  0xe4   : > { %v218_v16 = vmul.f32 %v216_v14, %v207_v13  ;;  %v227_v18 = vmul.f32 %v225_v15, %v207_v13 }
  0xe6   : > { %v220_v21 = vrot.slane %v218_v16, 1  ;;  %v229_v25 = vrot.slane %v227_v18, 2 }
  0xe8   : > { %v211_v19 = vpop.permute.xlu0 %210  ;;  %v234_v20 = vpop.permute.xlu1 %233 }
  0xe9   : > { %v213_v22 = vmul.f32 %v211_v19, %v207_v13  ;;  %v236_v24 = vmul.f32 %v234_v20, %v207_v13  ;;  %v334_v20 = vld [vmem:[#allocation2 + $0x60] ss:$0 sm:$0xff] }
  0xeb   : > { %v222_v26 = vadd.f32 %v220_v21, %v213_v22  ;;  %v238_v27 = vrot.slane %v236_v24, 3 }
  0xed   : > { %v231_v28 = vadd.f32 %v229_v25, %v222_v26 }
  0xef   : > { %v240_v30 = vadd.f32 %v238_v27, %v231_v28  ;;  %v1936_v27 = vmov 1983009808  }
  0xf0   : > { %v350_v28 = vunpack.c.l.s4 %v1936_v27 }
  0xf1   : > { %v244_v31 = vrot.slane %v240_v30, %v2113_v29 }
  0xf3   : > { %v2117_v32 = vsub.f32 %v2097_v3, %v244_v31 }
  0xf5   : > { %v246_v33 = vmul.f32 %v2117_v32, %v2117_v32 }
  0xf7   : > { %v247_v34 = vsel %vm197_vm0, %v246_v33, 0.0  ;;  %v351_v33 = vunpack.c.0.s8 %v350_v28 }
  0xf8   : > { %v248_v35 = vrot.slane %v247_v34, 4 }
  0xfa   : > { %v249_v36 = vadd.f32 %v248_v35, %v247_v34 }
  0xfc   : > { %v250_v37 = vrot.slane %v249_v36, 2 }
  0xfe   : > { %v251_v38 = vadd.f32 %v250_v37, %v249_v36 }
 0x100   : > { %v252_v39 = vrot.slane %v251_v38, 1 }
 0x102   : > { %v253_v40 = vadd.f32 %v252_v39, %v251_v38  ;;  %v354_v38 = vsub.s32 %v351_v33, %v2110_v23 }
 0x104   : > { %v254_v41 = vmul.f32 0.125, %v253_v40 }
 0x106   : > { %v255_v42 = vadd.f32 1e-08, %v254_v41  ;;  %v1699_v41 = vld [vmem:[#allocation5 + $0x20] ss:$8 sps:$4 sm:$0xff]  }
 0x107   : > { %1586 = vmatpush3.bf16.msra.mxu1 %v1699_v41 }
 0x108   : > { %1785 = vrsqrt.f32 %v255_v42  ;;  %vm258_vm1 = vcmp.eq.f32.partialorder %v255_v42, inf  ;;  %v261_v45 = vand.u32 2147483648, %v255_v42  ;;  %vm260_vm2 = vcmp.eq.f32.partialorder %v255_v42, 0.0  ;;  %1587 = vmatprep.subr.bf16.mxu1 %v1935_v6 }
 0x112   : > { %v1786_v43 = vpop.eup %1785 }
 0x113   : > { %v257_v44 = vmul.f32 %v1786_v43, %v255_v42 }
 0x115   : > { %v259_v46 = vsel %vm258_vm1, %v255_v42, %v257_v44 }
 0x116   : > { %v262_v47 = vsel %vm260_vm2, %v261_v45, %v259_v46  ;;  %v1700_v46 = vld [vmem:[#allocation5 + $0x30] ss:$8 sps:$4 sm:$0xff]  }
 0x117   : > { %266 = vperm.xlu0 %1687, %v262_v47   ;;  %271 = vperm.xlu1 %1690, %v262_v47  }
 0x118   : > { %1588 = vmatpush3.bf16.msra.mxu1 %v1700_v46 }
 0x11b   : > { %1692 = vset.pattern.permute.xlu0 %v1934_v12  ;;  %1691 = vset.pattern.permute.xlu1 %v1932_v1 }
 0x11c   : > { %289 = vperm.xlu0 %1692, %v262_v47   ;;  %280 = vperm.xlu1 %1691, %v262_v47  }
 0x120   : > { %1695 = vset.pattern.permute.xlu0 %v1932_v1  ;;  %1693 = vset.pattern.permute.xlu1 %v1933_v2  ;;  %v300_v1 = vsub.f32 %v2101_v11, %v240_v30  ;;  %v1937_v30 = vmov 1934713408  }
 0x121   : > { %v365_v31 = vunpack.c.l.s4 %v1937_v30 }
 0x123   : > { %v366_v35 = vunpack.c.0.s8 %v365_v31 }
 0x125   : > { %v369_v39 = vsub.s32 %v366_v35, %v2110_v23 }
 0x196   : > { %v267_v49 = vpop.permute.xlu0 %266  ;;  %v272_v50 = vpop.permute.xlu1 %271 }
 0x197   : > { %v274_v51 = vmul.f32 %v272_v50, %v263_v48  ;;  %v269_v55 = vmul.f32 %v267_v49, %v263_v48 }
 0x199   : > { %v276_v52 = vrot.slane %v274_v51, 1 }
 0x19b   : > { %v290_v53 = vpop.permute.xlu0 %289  ;;  %v281_v54 = vpop.permute.xlu1 %280  ;;  %v278_v58 = vadd.f32 %v276_v52, %v269_v55  ;;  %v355_v52 = vrot.slane %v2097_v3, %v354_v38 }
 0x19c   : > { %v292_v56 = vmul.f32 %v290_v53, %v263_v48  ;;  %v283_v57 = vmul.f32 %v281_v54, %v263_v48 }
 0x19d   : > { %v2150_v53 = vrot.slane %v355_v52, %v369_v39 }
 0x19e   : > { %v285_v59 = vrot.slane %v283_v57, 2  ;;  %v294_v60 = vrot.slane %v292_v56, 3  ;;  %v363_v56 = vcombine.high %v355_v52, %v1935_v6  ;;  %v348_v57 = vcombine.high %v2097_v3, %v1935_v6  ;;  %v1717_v52 = vld [vmem:[#allocation5 + $0x174] ss:$8 sps:$4 sm:$0xff]  }
 0x1a0   : > { %v287_v61 = vadd.f32 %v285_v59, %v278_v58  ;;  %v393_v58 = vcombine.high %v2150_v53, %v1935_v6  ;;  %v1701_v59 = vld [vmem:[#allocation5 + $0x4] ss:$8 sps:$4 sm:$0xff]  }
 0x1a1   : > { %564 = vmatprep.subr.bf16.mxu0 %v1701_v59 }
 0x1a2   : > { %v296_v62 = vadd.f32 %v294_v60, %v287_v61  ;;  %v377_v61 = vrot.slane %v363_v56, %v369_v39  ;;  %v1748_v56 = vld [vmem:[#allocation5 + $0x80] ss:$8 sps:$4 sm:$0xff]  }
 0x1a4   : > { %vm297_vm3 = vcmp.le.f32.partialorder %v296_v62, 1e-08 }
 0x1a5   : > { %v298_v63 = vsel %vm297_vm3, 1.0, %v296_v62  ;;  %v362_v62 = vrot.slane %v348_v57, %v354_v38 }
 0x1a6   : > { %1787 = vrcp.f32 %v298_v63  ;;  %v394_v63 = vcombine.high %v377_v61, %v1935_v6 }
 0x1a7   : > { %v385_v3 = vrot.slane %v362_v62, %v369_v39 }
 0x1b0   : > { %v1788_v4 = vpop.eup %1787 }
 0x1b1   : > { %v301_v5 = vmul.f32 %v1788_v4, %v300_v1  ;;  %v395_v1 = vcombine.high %v385_v3, %v1935_v6 }
 0x1b3   : > { %319 = vperm.xlu0 %1695, %v301_v5   ;;  %305 = vperm.xlu1 %1693, %v301_v5  }
 0x1b7   : > { %1694 = vset.pattern.permute.xlu1 %v1931_v0  ;;  %1698 = vset.pattern.permute.xlu0 %v1933_v2  ;;  %v330_v0 = vrot.slane %v302_v8, 3 }
 0x1b8   : > { %310 = vperm.xlu1 %1694, %v301_v5  }
 0x1bc   : > { %1696 = vset.pattern.permute.xlu1 %v1934_v12 }
 0x1bd   : > { %327 = vperm.xlu1 %1696, %v301_v5  }
 0x1c1   : > { %1697 = vset.pattern.permute.xlu1 %v1933_v2 }
 0x232   : > { %v306_v7 = vpop.permute.xlu1 %305  ;;  %v320_v11 = vpop.permute.xlu0 %319 }
 0x233   : > { %v308_v14 = vmul.f32 %v306_v7, %v302_v8  ;;  %v324_v16 = vmul.f32 %v322_v10, %v320_v11  ;;  %v609_v7 = vld [vmem:[#allocation2 + $0x30] ss:$0 sm:$0xff]  ;;  %v1703_v8 = vld [vmem:[#allocation5] ss:$8 sps:$4 sm:$0xff]  }
 0x234   : > { %565 = vmatpush1.bf16.msra.mxu0 %v1703_v8  ;;  %v1706_v11 = vld [vmem:[#allocation5 + $0x10] ss:$8 sps:$4 sm:$0xff]   ;;  %v1726_v8 = vld [vmem:[#allocation5 + $0x1a4] ss:$8 sps:$4 sm:$0xff]  }
 0x237   : > { %v311_v13 = vpop.permute.xlu1 %310 }
 0x238   : > { %v316_v15 = vmul.f32 %v314_v9, %v311_v13  ;;  %v1704_v9 = vld [vmem:[#allocation5 + $0x14] ss:$8 sps:$4 sm:$0xff]   ;;  %v1709_v13 = vld [vmem:[#allocation5 + $0x44] ss:$8 sps:$4 sm:$0xff]  }
 0x239   : > { %566 = vmatprep.subr.bf16.mxu0 %v1704_v9  ;;  %v1724_v9 = vld [vmem:[#allocation5 + $0x1a0] ss:$8 sps:$4 sm:$0xff]  }
 0x23a   : > { %v317_v17 = vadd.f32 %v316_v15, %v308_v14  ;;  %567 = vmatpush1.bf16.msra.mxu0 %v1706_v11  ;;  %v672_v14 = vld [vmem:[#allocation5 + $0x60] sm:$0xff]  ;;  %v1727_v11 = vld [vmem:[#allocation5 + $0x1b0] ss:$8 sps:$4 sm:$0xff]  }
 0x23b   : > { %697 = vmatprep.subr.bf16.mxu0 %v1709_v13  ;;  %v1492_v15 = vcombine.high %v672_v14, %v672_v14  ;;  %v1732_v13 = vld [vmem:[#allocation5 + $0x1c4] ss:$8 sps:$4 sm:$0xff]  }
 0x23c   : > { %v325_v18 = vadd.f32 %v324_v16, %v317_v17  ;;  %v328_v19 = vpop.permute.xlu1 %327 }
 0x23d   : > { %v332_v12 = vmul.f32 %v330_v0, %v328_v19  ;;  %1493 = vmatprep.subr.msk.bf16.mxu1 %vm746_vm5, %v1492_v15  ;;  %v1735_v15 = vld [vmem:[#allocation5 + $0x1d4] ss:$8 sps:$4 sm:$0xff]  }
 0x23f   : > { %v333_v21 = vadd.f32 %v332_v12, %v325_v18 }
 0x241   : > { %v335_v22 = vadd.f32 %v334_v20, %v333_v21 }
 0x243   : > { %v1477_v24 = vmul.f32 -1.442695, %v335_v22 }
 0x245   : > { %1789 = vpow2.f32 %v1477_v24 }
 0x24f   : > { %v1790_v25 = vpop.eup %1789 }
 0x250   : > { %v339_v26 = vadd.f32 1.0, %v1790_v25 }
 0x252   : > { %1791 = vrcp.f32 %v339_v26  ;;  %v1491_v26 = vcombine.low %v672_v14, %v672_v14  ;;  %v1730_v14 = vld [vmem:[#allocation5 + $0x1c0] ss:$8 sps:$4 sm:$0xff]  }
 0x254   : > { %v748_v33 = vsel %vm746_vm5, %v1491_v26, 0 }
 0x25c   : > { %v1792_v34 = vpop.eup %1791 }
 0x25d   : > { %v342_v36 = vmul.f32 %v1792_v34, %v1788_v4  ;;  %v378_v4 = vcombine.high %v362_v62, %v1935_v6 }
 0x25f   : > { %v346_v37 = vrot.slane %v342_v36, %v2113_v29  ;;  %v392_v5 = vrot.slane %v378_v4, %v369_v39  ;;  %v1718_v4 = vld [vmem:[#allocation5 + $0x180] ss:$8 sps:$4 sm:$0xff]  }
 0x261   : > { %v347_v40 = vmul.f32 %v346_v37, %v2117_v32  ;;  %v396_v10 = vcombine.high %v392_v5, %v1935_v6 }
 0x263   : > { %v446_v42 = vrot.slane %v347_v40, %v354_v38  ;;  %v439_v43 = vcombine.high %v347_v40, %v1935_v6 }
 0x265   : > { %v2137_v44 = vrot.slane %v446_v42, %v369_v39  ;;  %v454_v45 = vcombine.high %v446_v42, %v1935_v6  ;;  %v453_v49 = vrot.slane %v439_v43, %v354_v38 }
 0x267   : > { %v484_v47 = vcombine.high %v2137_v44, %v1935_v6  ;;  %v468_v48 = vrot.slane %v454_v45, %v369_v39  ;;  %v476_v50 = vrot.slane %v453_v49, %v369_v39  ;;  %v469_v51 = vcombine.high %v453_v49, %v1935_v6  ;;  %v1707_v49 = vld [vmem:[#allocation5 + $0x40] ss:$8 sps:$4 sm:$0xff]  }
 0x269   : > { %489 = vrot.lane.b32.xlu1 %v484_v47, %s1938_s20  ;;  %493 = vrot.lane.b32.xlu0 %v468_v48, %s1939_s25  ;;  %v485_v32 = vcombine.high %v468_v48, %v1935_v6  ;;  %v486_v54 = vcombine.high %v476_v50, %v1935_v6  ;;  %v483_v55 = vrot.slane %v469_v51, %v369_v39  ;;  %v1710_v51 = vld [vmem:[#allocation5 + $0x50] ss:$8 sps:$4 sm:$0xff]  }
 0x26b   : > { %v487_v60 = vcombine.high %v483_v55, %v1935_v6 }
 0x26d   : > { %497 = vrot.lane.b32.xlu1 %v485_v32, %s1941_s28  ;;  %501 = vrot.lane.b32.xlu0 %v476_v50, %s1942_s30  ;;  %v1712_v50 = vld [vmem:[#allocation5 + $0x54] ss:$8 sps:$4 sm:$0xff]  }
 0x271   : > { %505 = vrot.lane.b32.xlu1 %v486_v54, %s1943_s4  ;;  %509 = vrot.lane.b32.xlu0 %v483_v55, %s1944_s5  ;;  %v1743_v54 = vld [vmem:[#allocation5 + $0x70] ss:$8 sps:$4 sm:$0xff]   ;;  %v1744_v55 = vld [vmem:[#allocation5 + $0x100] ss:$8 sps:$4 sm:$0xff]  }
 0x275   : > { %513 = vrot.lane.b32.xlu1 %v487_v60, %s1945_s6  ;;  %398 = vrot.lane.b32.xlu0 %v393_v58, %s1938_s20  ;;  %s1857_s20 = sshll.u32 %s1948_s19, 4  ;;  %s1858_s20 = int_to_ptr.vmem [resolvable:$false] %s1857_s20 }
 0x276   : > { %p1860_p4 = scmp.lt.s32.totalorder %s2227_s11, %s1858_s20 }
 0x279   : > { %402 = vrot.lane.b32.xlu1 %v377_v61, %s1939_s25  ;;  %406 = vrot.lane.b32.xlu0 %v394_v63, %s1941_s28  ;;  %v1715_v63 = vld [vmem:[#allocation5 + $0x170] ss:$8 sps:$4 sm:$0xff]   ;;  %s1859_s25 = scalar_lea.vmem %s1858_s20, 32 }
 0x27a   : > { %p1861_p7 = scmp.lt.s32.totalorder %s1859_s25, %s1853_s16 }
 0x27c   : > { %p1862_p8 = por %p1861_p7, %p1860_p4 }
 0x27d   : > { %410 = vrot.lane.b32.xlu1 %v385_v3, %s1942_s30  ;;  %414 = vrot.lane.b32.xlu0 %v395_v1, %s1943_s4  ;;  %v1720_v1 = vld [vmem:[#allocation5 + $0x184] ss:$8 sps:$4 sm:$0xff]  }
 0x27e   : > { %p1863_p11 = pnand %p1862_p8, %p1856_p3 }
 0x281   : > { %612 = vperm.xlu1 %1697, %v609_v7   ;;  %418 = vrot.lane.b32.xlu0 %v392_v5, %s1944_s5  ;;  %v1723_v5 = vld [vmem:[#allocation5 + $0x194] ss:$8 sps:$4 sm:$0xff]   ;;  %v1721_v7 = vld [vmem:[#allocation5 + $0x190] ss:$8 sps:$4 sm:$0xff]  }
 0x285   : > { %422 = vrot.lane.b32.xlu1 %v396_v10, %s1945_s6  ;;  %v1729_v10 = vld [vmem:[#allocation5 + $0x1b4] ss:$8 sps:$4 sm:$0xff]  }
 0x2db   : > { %v490_v0 = vpop.permute.xlu1 %489  ;;  %v494_v16 = vpop.permute.xlu0 %493 }
 0x2dc   : > { %v516_v17 = vsel %vm197_vm0, %v2137_v44, %v490_v0  ;;  %v1733_v0 = vld [vmem:[#allocation5 + $0x1d0] ss:$8 sps:$4 sm:$0xff]  }
 0x2dd   : > { %v517_v18 = vsel %vm426_vm6, %v516_v17, %v494_v16  ;;  %v1738_v17 = vld [vmem:[#allocation5 + $0x1e4] ss:$8 sps:$4 sm:$0xff]  }
 0x2df   : > { %v498_v19 = vpop.permute.xlu1 %497  ;;  %v502_v12 = vpop.permute.xlu0 %501 }
 0x2e0   : > { %v518_v20 = vsel %vm428_vm7, %v517_v18, %v498_v19 }
 0x2e1   : > { %v519_v21 = vsel %vm430_vm8, %v518_v20, %v502_v12  ;;  %v1736_v20 = vld [vmem:[#allocation5 + $0x1e0] ss:$8 sps:$4 sm:$0xff]  }
 0x2e3   : > { %v506_v22 = vpop.permute.xlu1 %505  ;;  %v510_v25 = vpop.permute.xlu0 %509 }
 0x2e4   : > { %v520_v24 = vsel %vm432_vm9, %v519_v21, %v506_v22  ;;  %v1742_v21 = vld [vmem:[#allocation5 + $0x1f4] ss:$8 sps:$4 sm:$0xff]   ;;  %v1740_v22 = vld [vmem:[#allocation5 + $0x1f0] ss:$8 sps:$4 sm:$0xff]  }
 0x2e5   : > { %v521_v27 = vsel %vm434_vm10, %v520_v24, %v510_v25  ;;  %v1747_v25 = vld [vmem:[#allocation5 + $0x204] ss:$8 sps:$4 sm:$0xff]  }
 0x2e7   : > { %v514_v28 = vpop.permute.xlu1 %513  ;;  %v399_v34 = vpop.permute.xlu0 %398 }
 0x2e8   : > { %v522_v30 = vsel %vm436_vm11, %v521_v27, %v514_v28  ;;  %v425_v35 = vsel %vm197_vm0, %v2150_v53, %v399_v34  ;;  %v1739_v53 = vld [vmem:[#allocation5 + $0xf0] ss:$8 sps:$4 sm:$0xff]  }
 0x2e9   : > { %v523_v31 = vpack.c.bf16 %v522_v30, %v522_v30  ;;  %v1745_v30 = vld [vmem:[#allocation5 + $0x200] ss:$8 sps:$4 sm:$0xff]   ;;  %v1750_v34 = vld [vmem:[#allocation5 + $0x210] ss:$8 sps:$4 sm:$0xff]  }
 0x2eb   : > { %1590 = vmatmul.mubr.msk.bf16.vlgmr.msra.gmra.mrb[0].mxu1 %vm560_vm12, %v523_v31  ;;  %v407_v36 = vpop.permute.xlu0 %406  ;;  %v403_v37 = vpop.permute.xlu1 %402 }
 0x2ec   : > { %754 = vmatpush1.bf16.msra.mxu1 %v748_v33  ;;  %785 = vmatprep.mubr.bf16.mxu1 %v1933_v2  ;;  %v427_v38 = vsel %vm426_vm6, %v425_v35, %v403_v37  ;;  %v1752_v33 = vld [vmem:[#allocation5 + $0x214] ss:$8 sps:$4 sm:$0xff]   ;;  %v1753_v35 = vld [vmem:[#allocation5 + $0x90] ss:$8 sps:$4 sm:$0xff]   ;;  %v1757_v37 = vld [vmem:[#allocation5 + $0x224] ss:$8 sps:$4 sm:$0xff]  }
 0x2ed   : > { %v429_v39 = vsel %vm428_vm7, %v427_v38, %v407_v36  ;;  %1186 = vmatprep.subr.bf16.mxu1 %v1717_v52  ;;  %v1754_v36 = vld [vmem:[#allocation5 + $0x120] ss:$8 sps:$4 sm:$0xff]   ;;  %v1777_v52 = vld [vmem:[#allocation5 + $0x264] ss:$8 sps:$4 sm:$0xff]  }
 0x2ee   : > { %v1755_v38 = vld [vmem:[#allocation5 + $0x220] ss:$8 sps:$4 sm:$0xff]  }
 0x2ef   : > { %v415_v40 = vpop.permute.xlu0 %414  ;;  %v411_v41 = vpop.permute.xlu1 %410 }
 0x2f0   : > { %v431_v42 = vsel %vm430_vm8, %v429_v39, %v411_v41  ;;  %v1758_v39 = vld [vmem:[#allocation5 + $0xa0] ss:$8 sps:$4 sm:$0xff]   ;;  %v1762_v41 = vld [vmem:[#allocation5 + $0x234] ss:$8 sps:$4 sm:$0xff]  }
 0x2f1   : > { %v433_v43 = vsel %vm432_vm9, %v431_v42, %v415_v40  ;;  %v1759_v40 = vld [vmem:[#allocation5 + $0x130] ss:$8 sps:$4 sm:$0xff]  }
 0x2f2   : > { %v1760_v42 = vld [vmem:[#allocation5 + $0x230] ss:$8 sps:$4 sm:$0xff]  }
 0x2f3   : > { %v419_v44 = vpop.permute.xlu0 %418 }
 0x2f4   : > { %v435_v46 = vsel %vm434_vm10, %v433_v43, %v419_v44  ;;  %v1763_v43 = vld [vmem:[#allocation5 + $0xb0] ss:$8 sps:$4 sm:$0xff]   ;;  %v1764_v44 = vld [vmem:[#allocation5 + $0x140] ss:$8 sps:$4 sm:$0xff]  }
 0x300   : > { %v613_v45 = vpop.permute.xlu1 %612 }
 0x304   : > { %v423_v47 = vpop.permute.xlu1 %422 }
 0x305   : > { %v437_v48 = vsel %vm436_vm11, %v435_v46, %v423_v47  ;;  %v1767_v46 = vld [vmem:[#allocation5 + $0x244] ss:$8 sps:$4 sm:$0xff]   ;;  %v1768_v47 = vld [vmem:[#allocation5 + $0xc0] ss:$8 sps:$4 sm:$0xff]  }
 0x306   : > { %v438_v32 = vpack.c.bf16 %v437_v48, %v437_v48  ;;  %v1769_v48 = vld [vmem:[#allocation5 + $0x150] ss:$8 sps:$4 sm:$0xff]  }
 0x308   : > { %1482 = vmatmul.mubr.msk.bf16.vlgmr.msra.gmra.mrb[0].mxu0 %vm560_vm12, %v438_v32  ;;  %v1770_v32 = vld [vmem:[#allocation5 + $0x250] ss:$8 sps:$4 sm:$0xff]  }
 0x309   : > { %698 = vmatpush1.bf16.msra.mxu0 %v1707_v49  ;;  %729 = vmatprep.mubr.bf16.mxu0 %v1933_v2  ;;  %v1772_v49 = vld [vmem:[#allocation5 + $0x254] ss:$8 sps:$4 sm:$0xff]  }
 0x30a   : > { %699 = vmatprep.subr.bf16.mxu0 %v1712_v50  ;;  %v1773_v50 = vld [vmem:[#allocation5 + $0xd0] ss:$8 sps:$4 sm:$0xff]  }
 0x30d   : > { %700 = vmatpush1.bf16.msra.mxu0 %v1710_v51  ;;  %v1774_v51 = vld [vmem:[#allocation5 + $0x160] ss:$8 sps:$4 sm:$0xff]  }
 0x30e   : > { %1558 = vmatprep.subr.bf16.mxu0 %v1739_v53  ;;  %v1775_v53 = vld [vmem:[#allocation5 + $0x260] ss:$8 sps:$4 sm:$0xff]  }
 0x310   : > { %1490 = vmatmul.mubr.msk.bf16.vlgmr.msra.gmra.mrb[4].mxu0 %vm560_vm12, %v523_v31  ;;  %v1749_v31 = vld [vmem:[#allocation5 + $0x110] ss:$8 sps:$4 sm:$0xff]  }
 0x311   : > { %1559 = vmatpush3.bf16.msra.mxu0 %v1743_v54  ;;  %v1778_v54 = vld [vmem:[#allocation5 + $0xe0] ss:$8 sps:$4 sm:$0xff]  }
 0x312   : > { %1560 = vmatprep.subr.bf16.mxu0 %v1744_v55  ;;  %v849_v55 = vld [vmem:[#allocation2 + $0x40] ss:$0 sm:$0xff] }
 0x313   : > { %852 = vperm.xlu0 %1698, %v849_v55  }
 0x315   : > { %1561 = vmatpush3.bf16.msra.mxu0 %v1748_v56  ;;  %v795_v56 = vld [vmem:[#allocation2 + $0x10] ss:$8 sm:$0x3] }
 0x316   : > { %1562 = vmatprep.subr.bf16.mxu0 %v1749_v31 }
 0x319   : > { %1563 = vmatpush3.bf16.msra.mxu0 %v1753_v35 }
 0x31a   : > { %1564 = vmatprep.subr.bf16.mxu0 %v1754_v36  ;;  %v1781_v36 = vld [vmem:[#allocation5 + $0x280] ss:$8 sps:$4 sm:$0xff]  }
 0x31d   : > { %1565 = vmatpush3.bf16.msra.mxu0 %v1758_v39  ;;  %v1784_v39 = vld [vmem:[#allocation5 + $0x2b0] ss:$8 sps:$4 sm:$0xff]  }
 0x31e   : > { %1566 = vmatprep.subr.bf16.mxu0 %v1759_v40  ;;  %v1281_v40 = vld [vmem:[#allocation2 + $0x20] ss:$8 sm:$0x3] }
 0x321   : > { %1567 = vmatpush3.bf16.msra.mxu0 %v1763_v43 }
 0x322   : > { %1568 = vmatprep.subr.bf16.mxu0 %v1764_v44 }
 0x325   : > { %1569 = vmatpush3.bf16.msra.mxu0 %v1768_v47 }
 0x326   : > { %1570 = vmatprep.subr.bf16.mxu0 %v1769_v48 }
 0x329   : > { %1571 = vmatpush3.bf16.msra.mxu0 %v1773_v50 }
 0x32a   : > { %1572 = vmatprep.subr.bf16.mxu0 %v1774_v51  ;;  %v1308_v51 = vld [vmem:[#allocation2 + $0x50] ss:$0 sm:$0xff] }
 0x32d   : > { %1573 = vmatpush3.bf16.msra.mxu0 %v1778_v54 }
 0x3be   : > { %v664_v57 = vpop.f32.mrb[0].mxu1 }
 0x3bf   : > { %v665_v58 = vadd.f32 %v664_v57, %v613_v45  ;;  %v1591_v59 = vpop.f32.mrb[1].mxu1  ;;  %v1765_v45 = vld [vmem:[#allocation5 + $0x240] ss:$8 sps:$4 sm:$0xff]  }
 0x3c0   : > { %v667_v60 = vpop.f32.mrb[2].mxu1  ;;  %v528_v57 = vld [vmem:[#allocation2] ss:$8 sm:$0x3]  ;;  %v800_v59 = vrot.slane %v795_v56, %v2113_v29 }
 0x3c1   : > { %v670_v61 = vmax.f32 %v665_v58, 0.0  ;;  %v1592_v62 = vpop.f32.mrb[3].mxu1  ;;  %v2198_v58 = vsub.s32 1, %v2110_v23 }
 0x3c2   : > { %v553_v62 = vrot.slane %v528_v57, %v2113_v29 }
 0x3c3   : > { %v671_v3 = vpack.c.bf16 %v670_v61, %v670_v61  ;;  %v804_v61 = vrot.slane %v795_v56, %v2198_v58 }
 0x3c5   : > { %1494 = vmatmul.mubr.msk.bf16.vlgmr.msra.gmra.mrb[4].mxu1 %vm426_vm6, %v671_v3 }
 0x3c6   : > { %1187 = vmatpush1.bf16.msra.mxu1 %v1715_v63 }
 0x3c7   : > { %1188 = vmatprep.subr.bf16.mxu1 %v1720_v1  ;;  %v557_v1 = vrot.slane %v528_v57, %v2198_v58 }
 0x3ca   : > { %1189 = vmatpush1.bf16.msra.mxu1 %v1718_v4 }
 0x3cb   : > { %1190 = vmatprep.subr.bf16.mxu1 %v1723_v5 }
 0x3ce   : > { %1191 = vmatpush1.bf16.msra.mxu1 %v1721_v7 }
 0x3cf   : > { %1192 = vmatprep.subr.bf16.mxu1 %v1726_v8 }
 0x3d2   : > { %1193 = vmatpush1.bf16.msra.mxu1 %v1724_v9 }
 0x3d3   : > { %1194 = vmatprep.subr.bf16.mxu1 %v1729_v10 }
 0x3d6   : > { %1195 = vmatpush1.bf16.msra.mxu1 %v1727_v11 }
 0x3d7   : > { %1196 = vmatprep.subr.bf16.mxu1 %v1732_v13 }
 0x3da   : > { %1197 = vmatpush1.bf16.msra.mxu1 %v1730_v14 }
 0x3db   : > { %v2189_v16 = vpop.f32.mrb[0].mxu0  ;;  %1198 = vmatprep.subr.bf16.mxu1 %v1735_v15 }
 0x3dc   : > { %v2191_v18 = vpop.f32.mrb[1].mxu0  ;;  %v599_v23 = vadd.f32 %v2189_v16, %v553_v62  ;;  %v993_v16 = vld [vmem:[#allocation5 + $0x270] sm:$0xff] }
 0x3dd   : > { %v602_v19 = vpop.f32.mrb[2].mxu0  ;;  %v601_v11 = vadd.f32 %v2191_v18, %v557_v1  ;;  %v1543_v18 = vcombine.low %v993_v16, %v993_v16 }
 0x3de   : > { %v603_v12 = vpop.f32.mrb[3].mxu0  ;;  %1199 = vmatpush1.bf16.msra.mxu1 %v1733_v0 }
 0x3df   : > { %1200 = vmatprep.subr.bf16.mxu1 %v1738_v17  ;;  %v1544_v12 = vcombine.high %v993_v16, %v993_v16 }
 0x3e1   : > { %1545 = vmatprep.subr.msk.bf16.mxu0 %vm746_vm5, %v1544_v12 }
 0x3e2   : > { %1201 = vmatpush1.bf16.msra.mxu1 %v1736_v20  ;;  %v1235_v20 = vsel %vm746_vm5, %v1543_v18, 0 }
 0x3e3   : > { %v2193_v24 = vpop.f32.mrb[4].mxu0  ;;  %1202 = vmatprep.subr.bf16.mxu1 %v1742_v21  ;;  %v853_v21 = vpop.permute.xlu0 %852 }
 0x3e4   : > { %v2195_v26 = vpop.f32.mrb[5].mxu0 }
 0x3e5   : > { %v735_v27 = vpop.f32.mrb[6].mxu0 }
 0x3e6   : > { %v736_v28 = vpop.f32.mrb[7].mxu0  ;;  %1203 = vmatpush1.bf16.msra.mxu1 %v1740_v22 }
 0x3e7   : > { %1204 = vmatprep.subr.bf16.mxu1 %v1747_v25 }
 0x3ea   : > { %1205 = vmatpush1.bf16.msra.mxu1 %v1745_v30 }
 0x3eb   : > { %1206 = vmatprep.subr.bf16.mxu1 %v1752_v33 }
 0x3ee   : > { %1207 = vmatpush1.bf16.msra.mxu1 %v1750_v34 }
 0x3ef   : > { %1208 = vmatprep.subr.bf16.mxu1 %v1757_v37  ;;  %v1782_v37 = vld [vmem:[#allocation5 + $0x290] ss:$8 sps:$4 sm:$0xff]  }
 0x3f2   : > { %1209 = vmatpush1.bf16.msra.mxu1 %v1755_v38  ;;  %v1783_v38 = vld [vmem:[#allocation5 + $0x2a0] ss:$8 sps:$4 sm:$0xff]  }
 0x3f3   : > { %1210 = vmatprep.subr.bf16.mxu1 %v1762_v41 }
 0x3f6   : > { %1211 = vmatpush1.bf16.msra.mxu1 %v1760_v42  ;;  %v1286_v42 = vrot.slane %v1281_v40, %v2198_v58 }
 0x3f7   : > { %1212 = vmatprep.subr.bf16.mxu1 %v1767_v46 }
 0x3fa   : > { %1213 = vmatpush1.bf16.msra.mxu1 %v1765_v45 }
 0x3fb   : > { %1214 = vmatprep.subr.bf16.mxu1 %v1772_v49 }
 0x3fe   : > { %1215 = vmatpush1.bf16.msra.mxu1 %v1770_v32 }
 0x3ff   : > { %1216 = vmatprep.subr.bf16.mxu1 %v1777_v52 }
 0x402   : > { %1217 = vmatpush1.bf16.msra.mxu1 %v1775_v53 }
 0x498   : > { %v787_v60 = vpop.f32.mrb[4].mxu1 }
 0x499   : > { %v788_v63 = vadd.f32 %v787_v60, %v2193_v24  ;;  %v789_v3 = vpop.f32.mrb[5].mxu1 }
 0x49a   : > { %v790_v4 = vadd.f32 %v789_v3, %v2195_v26  ;;  %v791_v5 = vpop.f32.mrb[6].mxu1 }
 0x49b   : > { %v807_v7 = vadd.f32 %v800_v59, %v788_v63  ;;  %v792_v8 = vpop.f32.mrb[7].mxu1 }
 0x49c   : > { %v808_v9 = vadd.f32 %v804_v61, %v790_v4 }
 0x49d   : > { %v809_v10 = vmax.f32 %v807_v7, 0.0 }
 0x49e   : > { %v810_v13 = vmax.f32 %v808_v9, 0.0 }
 0x49f   : > { %v811_v14 = vadd.f32 %v809_v10, %v599_v23 }
 0x4a0   : > { %v812_v15 = vadd.f32 %v810_v13, %v601_v11  ;;  %1291 = vrot.lane.b32.xlu1 %v810_v13, %s1946_s7 }
 0x4a1   : > { %1793 = vtanh.f32 %v811_v14 }
 0x4a2   : > { %1795 = vtanh.f32 %v812_v15 }
 0x4ab   : > { %v1794_v29 = vpop.eup %1793 }
 0x4ac   : > { %v1796_v0 = vpop.eup %1795  ;;  %v815_v19 = vpack.c.bf16 %v1794_v29, %v1794_v29 }
 0x4ad   : > { %v816_v17 = vpack.c.bf16 %v1796_v0, %v1796_v0 }
 0x4af   : > { %983 = vmatprep.mubr.bf16.mxu0 %v816_v17  ;;  %1218 = vmatprep.mubr.bf16.mxu1 %v816_v17 }
 0x4b0   : > { %984 = vmatmul.mubr.bf16.vlgmr.msra.gmra.mrb[8].mxu0 %v815_v19  ;;  %1219 = vmatmul.mubr.bf16.vlgmr.msra.gmra.mrb[8].mxu1 %v815_v19 }
 0x4b1   : > { %1272 = vmatprep.mubr.bf16.mxu0 %v1933_v2  ;;  %1241 = vmatpush1.bf16.msra.mxu0 %v1235_v20 }
 0x4b2   : > { %1593 = vmatprep.subr.bf16.mxu0 %v1935_v6 }
 0x512   : > { %v1292_v49 = vpop.permute.xlu1 %1291 }
 0x583   : > { %v1574_v22 = vpop.f32.mrb[8].mxu0  ;;  %v1220_v24 = vpop.f32.mrb[8].mxu1 }
 0x584   : > { %v1575_v25 = vpop.f32.mrb[9].mxu0  ;;  %v1221_v26 = vpop.f32.mrb[9].mxu1 }
 0x585   : > { %v1576_v27 = vadd.f32 %v1575_v25, %v1574_v22  ;;  %v1577_v28 = vpop.f32.mrb[10].mxu0  ;;  %v1223_v30 = vpop.f32.mrb[10].mxu1 }
 0x586   : > { %v1578_v31 = vpop.f32.mrb[11].mxu0  ;;  %v1224_v2 = vpop.f32.mrb[11].mxu1 }
 0x587   : > { %v986_v33 = vadd.f32 %v1576_v27, %v853_v21 }
 0x589   : > { %v991_v34 = vmax.f32 %v986_v33, 0.0 }
 0x58b   : > { %v992_v35 = vpack.c.bf16 %v991_v34, %v991_v34 }
 0x58d   : > { %1546 = vmatmul.mubr.msk.bf16.vlgmr.msra.gmra.mrb[12].mxu0 %vm426_vm6, %v992_v35 }
 0x58e   : > { %1601 = vmatprep.mubr.msk.bf16.mxu0 %vm1940_vm4, %v1935_v6  ;;  %1594 = vmatpush3.bf16.msra.mxu0 %v1781_v36 }
 0x58f   : > { %1595 = vmatprep.subr.bf16.mxu0 %v1935_v6 }
 0x592   : > { %1596 = vmatpush3.bf16.msra.mxu0 %v1782_v37 }
 0x593   : > { %1597 = vmatprep.subr.bf16.mxu0 %v1935_v6 }
 0x596   : > { %1598 = vmatpush3.bf16.msra.mxu0 %v1783_v38 }
 0x597   : > { %1599 = vmatprep.subr.bf16.mxu0 %v1935_v6 }
 0x59a   : > { %1600 = vmatpush3.bf16.msra.mxu0 %v1784_v39 }
 0x660   : > { %v1274_v41 = vpop.f32.mrb[12].mxu0 }
 0x661   : > { %v1275_v43 = vpop.f32.mrb[13].mxu0 }
 0x662   : > { %v1276_v44 = vadd.f32 %v1275_v43, %v1221_v26  ;;  %v1277_v45 = vpop.f32.mrb[14].mxu0 }
 0x663   : > { %v1278_v46 = vpop.f32.mrb[15].mxu0 }
 0x664   : > { %v1288_v47 = vadd.f32 %v1286_v42, %v1276_v44 }
 0x666   : > { %v1289_v48 = vmax.f32 %v1288_v47, 0.0 }
 0x668   : > { %1295 = vrot.lane.b32.xlu1 %v1289_v48, %s1947_s26 }
 0x6da   : > { %v1296_v32 = vpop.permute.xlu1 %1295 }
 0x6db   : > { %v1298_v6 = vsel %vm560_vm12, %v1292_v49, %v1296_v32 }
 0x6dc   : > { %v1299_v50 = vpack.c.bf16 %v1298_v6, %v1298_v6 }
 0x6de   : > { %1602 = vmatmul.mubr.msk.bf16.vlgmr.msra.gmra.mrb[16].mxu0 %vm1333_vm13, %v1299_v50 }
 0x7b1   : > { %v1371_v52 = vpop.f32.mrb[16].mxu0 }
 0x7b2   : > { %v1372_v53 = vadd.f32 %v1371_v52, %v1308_v51  ;;  %v1603_v54 = vpop.f32.mrb[17].mxu0 }
 0x7b3   : > { %v1374_v55 = vpop.f32.mrb[18].mxu0 }
 0x7b4   : > { %1377 = vst [vmem:[%s190_s10] sm:$0x1] %v1372_v53  ;;  %v1604_v56 = vpop.f32.mrb[19].mxu0 }
 0x7b5   : > { %1866 = shalt.err (!%p1863_p11)
}
 0x7b6   : > { %s1867_s28 = scalar_lea.hbm %s2225_s29, 16  ;;  %s1871_s5 = scalar_lea.hbm %s2270_s3, 32 }
 0x7b7   : > { %p1868_p13 = scmp.ne.s32.totalorder %s2225_s29, %s1867_s28  ;;  %p1872_p6 = scmp.lt.u32.totalorder %s2225_s29, %s2270_s3 }
 0x7b8   : > { %p1873_p9 = scmp.lt.u32.totalorder %s1871_s5, %s1867_s28  ;;  %p1875_p12 = scmp.lt.u32.totalorder %s1867_s28, %s2225_s29 }
 0x7b9   : > { %p1869_p0 = pnand %p1868_p13, %p2283_p1 }
 0x7ba   : > { %p1874_p10 = por %p1873_p9, %p1872_p6 }
 0x7bb   : > { %p1870_p5 = pneg %p1869_p0 }
 0x7bc   : > { %p1876_p2 = por %p1875_p12, %p1874_p10 }
 0x7be   : > { %p1877_p3 = pnand %p1876_p2, %p1870_p5 }
 0x7c0   : > { %1880 = shalt.err (!%p1877_p3)
}
 0x7c1   : > { %1613 = dma.vmem_to_hbm [thread:$0]  (%p2283_p1), %s2227_s11, 16, %s2225_s29, %s1379_s17  }
 0x7c2 PF: > { %p1630_p4 = scmp.ge.s32.totalorder %s1923_s15, 2  ;;  %s1403_s26 = sand.u32 1, %s1911_s12  }
 0x7c3   : > { %p2284_p7 = scmp.ne.s32.totalorder %s2275_s23, 0  ;;  %s1404_s8 = scalar_lea.sflag [#allocation4], %s1403_s26 }
 0x7c5   : > { %p1623_p8 = pnand %p1630_p4, %p2284_p7 }
 0x7c7   : > { %1906 = dma.done.wait (!%p1623_p8), %s1404_s8, 16  }
 0x7c8   : > { %1908 = vsyncadd (!%p1623_p8), %s1404_s8, 4294967280  ;;  %p15_p11 = scmp.ge.s32.totalorder %s1994_s18, 4   ;;  %s2285_s12 = smov %s1915_s13 }
 0x7c9   : > { %s2286_s13 = smov %s1919_s14  ;;  %s2287_s14 = smov %s2005_s21 }
 0x7ca   : > { %s2288_s15 = smov %s1994_s18  ;;  %17 = sbr.rel (!%p15_p11) target bundleno = 5 (0x5), region = 78 }
 0x7d1   :  { %1408 = vsyncpa [#allocation3], 1 }
 0x7d2   :  { %1410 = vsyncpa [#allocation3 + $0x1], 1 }
 0x7d3   :  { %1411 = vsyncpa [#allocation6], 1 }
 0x7d4   :  { %1412 = vsyncpa [#allocation4], 1 }
 0x7d5   :  { %1414 = vsyncpa [#allocation4 + $0x1], 1 }

</bundles_post_ra>
